<compile_context>
chip_gen: v7x
topology: tpu7x:2x2x1
jax: 0.10.0
libtpu: 0.0.40
codegen_flags: <defaults>
</compile_context>

<pallas_src>
import functools

import jax
import jax.numpy as jnp
from jax.experimental import pallas as pl
from jax.experimental.pallas import tpu as pltpu

embed_size = 16
hidden_size = 128
text = 'hello world, this is a simple text generation using LSTMs.'
chars = sorted(set(text))
vocab_size = len(chars)


def _lstm_fc_kernel(tok_ref, proj_ref, whh_ref, wfc_ref, bfc_ref, out_ref, *, B, B_pad, T, H):
    """tok_ref:  (B, T)        int32  SMEM  -- token ids
    proj_ref: (V_tab, 4H)   f32    VMEM  -- embedding @ W_ih^T + b_ih + b_hh, row-gatherable
    whh_ref:  (H, 4H)       bf16   VMEM
    wfc_ref:  (H, V_pad)    bf16   VMEM
    bfc_ref:  (1, V_pad)    f32    VMEM
    out_ref:  (B_pad, V_pad) f32   VMEM
    Gate order matches PyTorch nn.LSTM: i, f, g, o.  H = 128 so gate slices are lane-aligned.
    """

    def sigm(x):
        # sigmoid(x) = 0.5 * tanh(0.5 * x) + 0.5  -- one EUP op instead of exp + divide.
        return 0.5 * jnp.tanh(0.5 * x) + 0.5

    pad_rows = jnp.zeros((B_pad - B, 4 * H), jnp.float32) if B_pad > B else None

    h = jnp.zeros((B_pad, H), jnp.float32)
    c = jnp.zeros((B_pad, H), jnp.float32)

    # Fully unrolled serial recurrence (T small and static).  The per-step gather is independent
    # of h, so the scheduler can run it ahead of the recurrence's critical chain.
    for t in range(T):
        rows = [proj_ref[pl.ds(tok_ref[b, t], 1), :] for b in range(B)]
        if pad_rows is not None:
            rows.append(pad_rows)
        x_t = jnp.concatenate(rows, axis=0)                                # (B_pad, 4H) f32

        # One MXU push per step; input projection + both biases already folded into x_t.
        gates = x_t + jnp.dot(h.astype(jnp.bfloat16), whh_ref[...],
                              preferred_element_type=jnp.float32)          # (B_pad, 4H) f32
        i = sigm(gates[:, 0 * H:1 * H])
        f = sigm(gates[:, 1 * H:2 * H])
        g = jnp.tanh(gates[:, 2 * H:3 * H])
        o = sigm(gates[:, 3 * H:4 * H])
        c = f * c + i * g
        h = o * jnp.tanh(c)

    out_ref[...] = (jnp.dot(h.astype(jnp.bfloat16), wfc_ref[...],
                            preferred_element_type=jnp.float32)
                    + bfc_ref[...])


def init_params(key, vocab_size, embed_size, hidden_size):
    ks = jax.random.split(key, 7)
    s = 0.1
    return {
        'embedding': jax.random.normal(ks[0], (vocab_size, embed_size), jnp.float32) * s,
        'w_ih': jax.random.normal(ks[1], (4 * hidden_size, embed_size), jnp.float32) * s,
        'w_hh': jax.random.normal(ks[2], (4 * hidden_size, hidden_size), jnp.float32) * s,
        'b_ih': jax.random.normal(ks[3], (4 * hidden_size,), jnp.float32) * s,
        'b_hh': jax.random.normal(ks[4], (4 * hidden_size,), jnp.float32) * s,
        'fc_w': jax.random.normal(ks[5], (vocab_size, hidden_size), jnp.float32) * s,
        'fc_b': jax.random.normal(ks[6], (vocab_size,), jnp.float32) * s,
    }


def preprocess_params(params):
    """One-time, parameter-only preprocessing (NOT on the per-call path)."""
    H = params['w_hh'].shape[1]
    V = params['fc_w'].shape[0]
    V_tab = ((V + 7) // 8) * 8            # sublane-aligned gather table
    V_pad = ((V + 127) // 128) * 128      # lane-dense FC output / unmasked stores

    # Fuse embedding + input projection + both biases: project the tiny (V, E) table once.
    proj = (params['embedding'] @ params['w_ih'].T
            + params['b_ih'] + params['b_hh']).astype(jnp.float32)         # (V, 4H)
    proj = jnp.pad(proj, ((0, V_tab - V), (0, 0)))                          # (V_tab, 4H)

    whh_t = params['w_hh'].T.astype(jnp.bfloat16)                           # (H, 4H)
    wfc_t = jnp.pad(params['fc_w'].T,
                    ((0, 0), (0, V_pad - V))).astype(jnp.bfloat16)          # (H, V_pad)
    bfc = jnp.pad(params['fc_b'], (0, V_pad - V))[None, :].astype(jnp.float32)  # (1, V_pad)

    return {'proj_table': proj, 'whh_t': whh_t, 'wfc_t': wfc_t, 'bfc': bfc,
            'vocab_size': V, 'hidden_size': H}


def text_lstm_forward(tokens, prep):
    B, T = tokens.shape
    H = prep['hidden_size']
    V = prep['vocab_size']
    V_pad = prep['wfc_t'].shape[1]
    B_pad = max(8, ((B + 7) // 8) * 8)    # full sublanes in every vreg of the recurrence

    kernel = functools.partial(_lstm_fc_kernel, B=B, B_pad=B_pad, T=T, H=H)

    flops = T * 2 * B_pad * H * (4 * H) + 2 * B_pad * H * V_pad
    transcendentals = T * B_pad * 5 * H   # 3 tanh-form sigmoids + tanh(g) + tanh(c) per step
    bytes_accessed = (tokens.size * 4 + prep['proj_table'].size * 4
                      + prep['whh_t'].size * 2 + prep['wfc_t'].size * 2
                      + prep['bfc'].size * 4 + B_pad * V_pad * 4)

    out = pl.pallas_call(
        kernel,
        out_shape=jax.ShapeDtypeStruct((B_pad, V_pad), jnp.float32),
        in_specs=[pl.BlockSpec(memory_space=pltpu.MemorySpace.SMEM),   # token ids (scalars)
                  pl.BlockSpec(memory_space=pltpu.MemorySpace.VMEM),   # proj_table
                  pl.BlockSpec(memory_space=pltpu.MemorySpace.VMEM),   # W_hh^T (bf16)
                  pl.BlockSpec(memory_space=pltpu.MemorySpace.VMEM),   # W_fc^T (bf16)
                  pl.BlockSpec(memory_space=pltpu.MemorySpace.VMEM)],  # fc bias
        out_specs=pl.BlockSpec(memory_space=pltpu.MemorySpace.VMEM),
        cost_estimate=pl.CostEstimate(flops=flops,
                                      transcendentals=transcendentals,
                                      bytes_accessed=bytes_accessed),
    )(tokens.astype(jnp.int32), prep['proj_table'], prep['whh_t'], prep['wfc_t'], prep['bfc'])

    return out[:B, :V]


def text_lstm_reference(tokens, params):
    """Pure-JAX f32 reference matching torch semantics (silent sanity check)."""
    emb = params['embedding'][tokens]            # (B, T, E)
    B, T, E = emb.shape
    H = hidden_size
    h = jnp.zeros((B, H), jnp.float32)
    c = jnp.zeros((B, H), jnp.float32)
    for t in range(T):
        g = emb[:, t, :] @ params['w_ih'].T + params['b_ih'] + h @ params['w_hh'].T + params['b_hh']
        i = jax.nn.sigmoid(g[:, 0 * H:1 * H])
        f = jax.nn.sigmoid(g[:, 1 * H:2 * H])
        gg = jnp.tanh(g[:, 2 * H:3 * H])
        o = jax.nn.sigmoid(g[:, 3 * H:4 * H])
        c = f * c + i * gg
        h = o * jnp.tanh(c)
    return h @ params['fc_w'].T + params['fc_b']


if __name__ == "__main__":
    key = jax.random.PRNGKey(0)
    pkey, tkey = jax.random.split(key)
    params = init_params(pkey, vocab_size, embed_size, hidden_size)
    prep = preprocess_params(params)             # one-time, parameter-only

    batch, seq_len = 2, 8
    tokens = jax.random.randint(tkey, (batch, seq_len), 0, vocab_size, dtype=jnp.int32)

    out = text_lstm_forward(tokens, prep)
    out = jax.block_until_ready(out)

    ref = text_lstm_reference(tokens, params)
    assert out.shape == (batch, vocab_size)
    # Tolerance loosened vs. the f32 reference because W_hh / W_fc (and the h operand)
    # feed the MXU in bf16 (f32 accumulation) over T recurrence steps.
    assert jnp.allclose(out, ref, rtol=3e-2, atol=5e-3), float(jnp.max(jnp.abs(out - ref)))

    print("KERNEL_OK")
</pallas_src>

<mosaic_0001>
module attributes {stable_mosaic.version = 11 : i64} {
  func.func @_lstm_fc_kernel(%arg0: memref<2x8xi32, #tpu.memory_space<smem>>, %arg1: memref<24x512xf32, #tpu.memory_space<vmem>>, %arg2: memref<128x512xbf16, #tpu.memory_space<vmem>>, %arg3: memref<128x128xbf16, #tpu.memory_space<vmem>>, %arg4: memref<1x128xf32, #tpu.memory_space<vmem>>, %arg5: memref<8x128xf32, #tpu.memory_space<vmem>>) attributes {dimension_semantics = [], scalar_prefetch = 0 : i64, scratch_operands = 0 : i64, tpu.core_type = #tpu.core_type<tc>} {
    %cst = arith.constant 0.000000e+00 : f32
    %0 = vector.broadcast %cst : f32 to vector<6x512xf32>
    %cst_0 = arith.constant 0.000000e+00 : f32
    %1 = vector.broadcast %cst_0 : f32 to vector<8x128xf32>
    %cst_1 = arith.constant 0.000000e+00 : f32
    %2 = vector.broadcast %cst_1 : f32 to vector<8x128xf32>
    %c0 = arith.constant 0 : index
    %c0_2 = arith.constant 0 : index
    %3 = memref.load %arg0[%c0, %c0_2] : memref<2x8xi32, #tpu.memory_space<smem>>
    %4 = arith.index_cast %3 : i32 to index
    %c0_3 = arith.constant 0 : index
    %5 = vector.load %arg1[%4, %c0_3] : memref<24x512xf32, #tpu.memory_space<vmem>>, vector<1x512xf32>
    %c1 = arith.constant 1 : index
    %c0_4 = arith.constant 0 : index
    %6 = memref.load %arg0[%c1, %c0_4] : memref<2x8xi32, #tpu.memory_space<smem>>
    %7 = arith.index_cast %6 : i32 to index
    %c0_5 = arith.constant 0 : index
    %8 = vector.load %arg1[%7, %c0_5] : memref<24x512xf32, #tpu.memory_space<vmem>>, vector<1x512xf32>
    %9 = tpu.concatenate %5, %8, %0 in 0 : vector<1x512xf32>, vector<1x512xf32>, vector<6x512xf32> -> vector<8x512xf32>
    %10 = arith.truncf %1 : vector<8x128xf32> to vector<8x128xbf16>
    %c0_6 = arith.constant 0 : index
    %c0_7 = arith.constant 0 : index
    %11 = vector.load %arg2[%c0_6, %c0_7] : memref<128x512xbf16, #tpu.memory_space<vmem>>, vector<128x512xbf16>
    %cst_8 = arith.constant dense<0.000000e+00> : vector<8x512xf32>
    %12 = tpu.matmul %10, %11, %cst_8 {dimension_numbers = #tpu.dot_dimension_numbers<[1], [0], [0], [1], [0, 0, 1, 1], [], []>} : vector<8x128xbf16>, vector<128x512xbf16>, vector<8x512xf32> -> vector<8x512xf32>
    %13 = arith.addf %9, %12 : vector<8x512xf32>
    %14 = vector.extract_strided_slice %13 {offsets = [0, 0], sizes = [8, 128], strides = [1, 1]} : vector<8x512xf32> to vector<8x128xf32>
    %cst_9 = arith.constant 5.000000e-01 : f32
    %15 = vector.broadcast %cst_9 : f32 to vector<8x128xf32>
    %16 = arith.mulf %15, %14 : vector<8x128xf32>
    %17 = math.tanh %16 : vector<8x128xf32>
    %cst_10 = arith.constant 5.000000e-01 : f32
    %18 = vector.broadcast %cst_10 : f32 to vector<8x128xf32>
    %19 = arith.mulf %18, %17 : vector<8x128xf32>
    %cst_11 = arith.constant 5.000000e-01 : f32
    %20 = vector.broadcast %cst_11 : f32 to vector<8x128xf32>
    %21 = arith.addf %19, %20 : vector<8x128xf32>
    %22 = vector.extract_strided_slice %13 {offsets = [0, 128], sizes = [8, 128], strides = [1, 1]} : vector<8x512xf32> to vector<8x128xf32>
    %cst_12 = arith.constant 5.000000e-01 : f32
    %23 = vector.broadcast %cst_12 : f32 to vector<8x128xf32>
    %24 = arith.mulf %23, %22 : vector<8x128xf32>
    %25 = math.tanh %24 : vector<8x128xf32>
    %cst_13 = arith.constant 5.000000e-01 : f32
    %26 = vector.broadcast %cst_13 : f32 to vector<8x128xf32>
    %27 = arith.mulf %26, %25 : vector<8x128xf32>
    %cst_14 = arith.constant 5.000000e-01 : f32
    %28 = vector.broadcast %cst_14 : f32 to vector<8x128xf32>
    %29 = arith.addf %27, %28 : vector<8x128xf32>
    %30 = vector.extract_strided_slice %13 {offsets = [0, 256], sizes = [8, 128], strides = [1, 1]} : vector<8x512xf32> to vector<8x128xf32>
    %31 = math.tanh %30 : vector<8x128xf32>
    %32 = vector.extract_strided_slice %13 {offsets = [0, 384], sizes = [8, 128], strides = [1, 1]} : vector<8x512xf32> to vector<8x128xf32>
    %cst_15 = arith.constant 5.000000e-01 : f32
    %33 = vector.broadcast %cst_15 : f32 to vector<8x128xf32>
    %34 = arith.mulf %33, %32 : vector<8x128xf32>
    %35 = math.tanh %34 : vector<8x128xf32>
    %cst_16 = arith.constant 5.000000e-01 : f32
    %36 = vector.broadcast %cst_16 : f32 to vector<8x128xf32>
    %37 = arith.mulf %36, %35 : vector<8x128xf32>
    %cst_17 = arith.constant 5.000000e-01 : f32
    %38 = vector.broadcast %cst_17 : f32 to vector<8x128xf32>
    %39 = arith.addf %37, %38 : vector<8x128xf32>
    %40 = arith.mulf %29, %2 : vector<8x128xf32>
    %41 = arith.mulf %21, %31 : vector<8x128xf32>
    %42 = arith.addf %40, %41 : vector<8x128xf32>
    %43 = math.tanh %42 : vector<8x128xf32>
    %44 = arith.mulf %39, %43 : vector<8x128xf32>
    %c0_18 = arith.constant 0 : index
    %c1_19 = arith.constant 1 : index
    %45 = memref.load %arg0[%c0_18, %c1_19] : memref<2x8xi32, #tpu.memory_space<smem>>
    %46 = arith.index_cast %45 : i32 to index
    %c0_20 = arith.constant 0 : index
    %47 = vector.load %arg1[%46, %c0_20] : memref<24x512xf32, #tpu.memory_space<vmem>>, vector<1x512xf32>
    %c1_21 = arith.constant 1 : index
    %c1_22 = arith.constant 1 : index
    %48 = memref.load %arg0[%c1_21, %c1_22] : memref<2x8xi32, #tpu.memory_space<smem>>
    %49 = arith.index_cast %48 : i32 to index
    %c0_23 = arith.constant 0 : index
    %50 = vector.load %arg1[%49, %c0_23] : memref<24x512xf32, #tpu.memory_space<vmem>>, vector<1x512xf32>
    %51 = tpu.concatenate %47, %50, %0 in 0 : vector<1x512xf32>, vector<1x512xf32>, vector<6x512xf32> -> vector<8x512xf32>
    %52 = arith.truncf %44 : vector<8x128xf32> to vector<8x128xbf16>
    %c0_24 = arith.constant 0 : index
    %c0_25 = arith.constant 0 : index
    %53 = vector.load %arg2[%c0_24, %c0_25] : memref<128x512xbf16, #tpu.memory_space<vmem>>, vector<128x512xbf16>
    %cst_26 = arith.constant dense<0.000000e+00> : vector<8x512xf32>
    %54 = tpu.matmul %52, %53, %cst_26 {dimension_numbers = #tpu.dot_dimension_numbers<[1], [0], [0], [1], [0, 0, 1, 1], [], []>} : vector<8x128xbf16>, vector<128x512xbf16>, vector<8x512xf32> -> vector<8x512xf32>
    %55 = arith.addf %51, %54 : vector<8x512xf32>
    %56 = vector.extract_strided_slice %55 {offsets = [0, 0], sizes = [8, 128], strides = [1, 1]} : vector<8x512xf32> to vector<8x128xf32>
    %cst_27 = arith.constant 5.000000e-01 : f32
    %57 = vector.broadcast %cst_27 : f32 to vector<8x128xf32>
    %58 = arith.mulf %57, %56 : vector<8x128xf32>
    %59 = math.tanh %58 : vector<8x128xf32>
    %cst_28 = arith.constant 5.000000e-01 : f32
    %60 = vector.broadcast %cst_28 : f32 to vector<8x128xf32>
    %61 = arith.mulf %60, %59 : vector<8x128xf32>
    %cst_29 = arith.constant 5.000000e-01 : f32
    %62 = vector.broadcast %cst_29 : f32 to vector<8x128xf32>
    %63 = arith.addf %61, %62 : vector<8x128xf32>
    %64 = vector.extract_strided_slice %55 {offsets = [0, 128], sizes = [8, 128], strides = [1, 1]} : vector<8x512xf32> to vector<8x128xf32>
    %cst_30 = arith.constant 5.000000e-01 : f32
    %65 = vector.broadcast %cst_30 : f32 to vector<8x128xf32>
    %66 = arith.mulf %65, %64 : vector<8x128xf32>
    %67 = math.tanh %66 : vector<8x128xf32>
    %cst_31 = arith.constant 5.000000e-01 : f32
    %68 = vector.broadcast %cst_31 : f32 to vector<8x128xf32>
    %69 = arith.mulf %68, %67 : vector<8x128xf32>
    %cst_32 = arith.constant 5.000000e-01 : f32
    %70 = vector.broadcast %cst_32 : f32 to vector<8x128xf32>
    %71 = arith.addf %69, %70 : vector<8x128xf32>
    %72 = vector.extract_strided_slice %55 {offsets = [0, 256], sizes = [8, 128], strides = [1, 1]} : vector<8x512xf32> to vector<8x128xf32>
    %73 = math.tanh %72 : vector<8x128xf32>
    %74 = vector.extract_strided_slice %55 {offsets = [0, 384], sizes = [8, 128], strides = [1, 1]} : vector<8x512xf32> to vector<8x128xf32>
    %cst_33 = arith.constant 5.000000e-01 : f32
    %75 = vector.broadcast %cst_33 : f32 to vector<8x128xf32>
    %76 = arith.mulf %75, %74 : vector<8x128xf32>
    %77 = math.tanh %76 : vector<8x128xf32>
    %cst_34 = arith.constant 5.000000e-01 : f32
    %78 = vector.broadcast %cst_34 : f32 to vector<8x128xf32>
    %79 = arith.mulf %78, %77 : vector<8x128xf32>
    %cst_35 = arith.constant 5.000000e-01 : f32
    %80 = vector.broadcast %cst_35 : f32 to vector<8x128xf32>
    %81 = arith.addf %79, %80 : vector<8x128xf32>
    %82 = arith.mulf %71, %42 : vector<8x128xf32>
    %83 = arith.mulf %63, %73 : vector<8x128xf32>
    %84 = arith.addf %82, %83 : vector<8x128xf32>
    %85 = math.tanh %84 : vector<8x128xf32>
    %86 = arith.mulf %81, %85 : vector<8x128xf32>
    %c0_36 = arith.constant 0 : index
    %c2 = arith.constant 2 : index
    %87 = memref.load %arg0[%c0_36, %c2] : memref<2x8xi32, #tpu.memory_space<smem>>
    %88 = arith.index_cast %87 : i32 to index
    %c0_37 = arith.constant 0 : index
    %89 = vector.load %arg1[%88, %c0_37] : memref<24x512xf32, #tpu.memory_space<vmem>>, vector<1x512xf32>
    %c1_38 = arith.constant 1 : index
    %c2_39 = arith.constant 2 : index
    %90 = memref.load %arg0[%c1_38, %c2_39] : memref<2x8xi32, #tpu.memory_space<smem>>
    %91 = arith.index_cast %90 : i32 to index
    %c0_40 = arith.constant 0 : index
    %92 = vector.load %arg1[%91, %c0_40] : memref<24x512xf32, #tpu.memory_space<vmem>>, vector<1x512xf32>
    %93 = tpu.concatenate %89, %92, %0 in 0 : vector<1x512xf32>, vector<1x512xf32>, vector<6x512xf32> -> vector<8x512xf32>
    %94 = arith.truncf %86 : vector<8x128xf32> to vector<8x128xbf16>
    %c0_41 = arith.constant 0 : index
    %c0_42 = arith.constant 0 : index
    %95 = vector.load %arg2[%c0_41, %c0_42] : memref<128x512xbf16, #tpu.memory_space<vmem>>, vector<128x512xbf16>
    %cst_43 = arith.constant dense<0.000000e+00> : vector<8x512xf32>
    %96 = tpu.matmul %94, %95, %cst_43 {dimension_numbers = #tpu.dot_dimension_numbers<[1], [0], [0], [1], [0, 0, 1, 1], [], []>} : vector<8x128xbf16>, vector<128x512xbf16>, vector<8x512xf32> -> vector<8x512xf32>
    %97 = arith.addf %93, %96 : vector<8x512xf32>
    %98 = vector.extract_strided_slice %97 {offsets = [0, 0], sizes = [8, 128], strides = [1, 1]} : vector<8x512xf32> to vector<8x128xf32>
    %cst_44 = arith.constant 5.000000e-01 : f32
    %99 = vector.broadcast %cst_44 : f32 to vector<8x128xf32>
    %100 = arith.mulf %99, %98 : vector<8x128xf32>
    %101 = math.tanh %100 : vector<8x128xf32>
    %cst_45 = arith.constant 5.000000e-01 : f32
    %102 = vector.broadcast %cst_45 : f32 to vector<8x128xf32>
    %103 = arith.mulf %102, %101 : vector<8x128xf32>
    %cst_46 = arith.constant 5.000000e-01 : f32
    %104 = vector.broadcast %cst_46 : f32 to vector<8x128xf32>
    %105 = arith.addf %103, %104 : vector<8x128xf32>
    %106 = vector.extract_strided_slice %97 {offsets = [0, 128], sizes = [8, 128], strides = [1, 1]} : vector<8x512xf32> to vector<8x128xf32>
    %cst_47 = arith.constant 5.000000e-01 : f32
    %107 = vector.broadcast %cst_47 : f32 to vector<8x128xf32>
    %108 = arith.mulf %107, %106 : vector<8x128xf32>
    %109 = math.tanh %108 : vector<8x128xf32>
    %cst_48 = arith.constant 5.000000e-01 : f32
    %110 = vector.broadcast %cst_48 : f32 to vector<8x128xf32>
    %111 = arith.mulf %110, %109 : vector<8x128xf32>
    %cst_49 = arith.constant 5.000000e-01 : f32
    %112 = vector.broadcast %cst_49 : f32 to vector<8x128xf32>
    %113 = arith.addf %111, %112 : vector<8x128xf32>
    %114 = vector.extract_strided_slice %97 {offsets = [0, 256], sizes = [8, 128], strides = [1, 1]} : vector<8x512xf32> to vector<8x128xf32>
    %115 = math.tanh %114 : vector<8x128xf32>
    %116 = vector.extract_strided_slice %97 {offsets = [0, 384], sizes = [8, 128], strides = [1, 1]} : vector<8x512xf32> to vector<8x128xf32>
    %cst_50 = arith.constant 5.000000e-01 : f32
    %117 = vector.broadcast %cst_50 : f32 to vector<8x128xf32>
    %118 = arith.mulf %117, %116 : vector<8x128xf32>
    %119 = math.tanh %118 : vector<8x128xf32>
    %cst_51 = arith.constant 5.000000e-01 : f32
    %120 = vector.broadcast %cst_51 : f32 to vector<8x128xf32>
    %121 = arith.mulf %120, %119 : vector<8x128xf32>
    %cst_52 = arith.constant 5.000000e-01 : f32
    %122 = vector.broadcast %cst_52 : f32 to vector<8x128xf32>
    %123 = arith.addf %121, %122 : vector<8x128xf32>
    %124 = arith.mulf %113, %84 : vector<8x128xf32>
    %125 = arith.mulf %105, %115 : vector<8x128xf32>
    %126 = arith.addf %124, %125 : vector<8x128xf32>
    %127 = math.tanh %126 : vector<8x128xf32>
    %128 = arith.mulf %123, %127 : vector<8x128xf32>
    %c0_53 = arith.constant 0 : index
    %c3 = arith.constant 3 : index
    %129 = memref.load %arg0[%c0_53, %c3] : memref<2x8xi32, #tpu.memory_space<smem>>
    %130 = arith.index_cast %129 : i32 to index
    %c0_54 = arith.constant 0 : index
    %131 = vector.load %arg1[%130, %c0_54] : memref<24x512xf32, #tpu.memory_space<vmem>>, vector<1x512xf32>
    %c1_55 = arith.constant 1 : index
    %c3_56 = arith.constant 3 : index
    %132 = memref.load %arg0[%c1_55, %c3_56] : memref<2x8xi32, #tpu.memory_space<smem>>
    %133 = arith.index_cast %132 : i32 to index
    %c0_57 = arith.constant 0 : index
    %134 = vector.load %arg1[%133, %c0_57] : memref<24x512xf32, #tpu.memory_space<vmem>>, vector<1x512xf32>
    %135 = tpu.concatenate %131, %134, %0 in 0 : vector<1x512xf32>, vector<1x512xf32>, vector<6x512xf32> -> vector<8x512xf32>
    %136 = arith.truncf %128 : vector<8x128xf32> to vector<8x128xbf16>
    %c0_58 = arith.constant 0 : index
    %c0_59 = arith.constant 0 : index
    %137 = vector.load %arg2[%c0_58, %c0_59] : memref<128x512xbf16, #tpu.memory_space<vmem>>, vector<128x512xbf16>
    %cst_60 = arith.constant dense<0.000000e+00> : vector<8x512xf32>
    %138 = tpu.matmul %136, %137, %cst_60 {dimension_numbers = #tpu.dot_dimension_numbers<[1], [0], [0], [1], [0, 0, 1, 1], [], []>} : vector<8x128xbf16>, vector<128x512xbf16>, vector<8x512xf32> -> vector<8x512xf32>
    %139 = arith.addf %135, %138 : vector<8x512xf32>
    %140 = vector.extract_strided_slice %139 {offsets = [0, 0], sizes = [8, 128], strides = [1, 1]} : vector<8x512xf32> to vector<8x128xf32>
    %cst_61 = arith.constant 5.000000e-01 : f32
    %141 = vector.broadcast %cst_61 : f32 to vector<8x128xf32>
    %142 = arith.mulf %141, %140 : vector<8x128xf32>
    %143 = math.tanh %142 : vector<8x128xf32>
    %cst_62 = arith.constant 5.000000e-01 : f32
    %144 = vector.broadcast %cst_62 : f32 to vector<8x128xf32>
    %145 = arith.mulf %144, %143 : vector<8x128xf32>
    %cst_63 = arith.constant 5.000000e-01 : f32
    %146 = vector.broadcast %cst_63 : f32 to vector<8x128xf32>
    %147 = arith.addf %145, %146 : vector<8x128xf32>
    %148 = vector.extract_strided_slice %139 {offsets = [0, 128], sizes = [8, 128], strides = [1, 1]} : vector<8x512xf32> to vector<8x128xf32>
    %cst_64 = arith.constant 5.000000e-01 : f32
    %149 = vector.broadcast %cst_64 : f32 to vector<8x128xf32>
    %150 = arith.mulf %149, %148 : vector<8x128xf32>
    %151 = math.tanh %150 : vector<8x128xf32>
    %cst_65 = arith.constant 5.000000e-01 : f32
    %152 = vector.broadcast %cst_65 : f32 to vector<8x128xf32>
    %153 = arith.mulf %152, %151 : vector<8x128xf32>
    %cst_66 = arith.constant 5.000000e-01 : f32
    %154 = vector.broadcast %cst_66 : f32 to vector<8x128xf32>
    %155 = arith.addf %153, %154 : vector<8x128xf32>
    %156 = vector.extract_strided_slice %139 {offsets = [0, 256], sizes = [8, 128], strides = [1, 1]} : vector<8x512xf32> to vector<8x128xf32>
    %157 = math.tanh %156 : vector<8x128xf32>
    %158 = vector.extract_strided_slice %139 {offsets = [0, 384], sizes = [8, 128], strides = [1, 1]} : vector<8x512xf32> to vector<8x128xf32>
    %cst_67 = arith.constant 5.000000e-01 : f32
    %159 = vector.broadcast %cst_67 : f32 to vector<8x128xf32>
    %160 = arith.mulf %159, %158 : vector<8x128xf32>
    %161 = math.tanh %160 : vector<8x128xf32>
    %cst_68 = arith.constant 5.000000e-01 : f32
    %162 = vector.broadcast %cst_68 : f32 to vector<8x128xf32>
    %163 = arith.mulf %162, %161 : vector<8x128xf32>
    %cst_69 = arith.constant 5.000000e-01 : f32
    %164 = vector.broadcast %cst_69 : f32 to vector<8x128xf32>
    %165 = arith.addf %163, %164 : vector<8x128xf32>
    %166 = arith.mulf %155, %126 : vector<8x128xf32>
    %167 = arith.mulf %147, %157 : vector<8x128xf32>
    %168 = arith.addf %166, %167 : vector<8x128xf32>
    %169 = math.tanh %168 : vector<8x128xf32>
    %170 = arith.mulf %165, %169 : vector<8x128xf32>
    %c0_70 = arith.constant 0 : index
    %c4 = arith.constant 4 : index
    %171 = memref.load %arg0[%c0_70, %c4] : memref<2x8xi32, #tpu.memory_space<smem>>
    %172 = arith.index_cast %171 : i32 to index
    %c0_71 = arith.constant 0 : index
    %173 = vector.load %arg1[%172, %c0_71] : memref<24x512xf32, #tpu.memory_space<vmem>>, vector<1x512xf32>
    %c1_72 = arith.constant 1 : index
    %c4_73 = arith.constant 4 : index
    %174 = memref.load %arg0[%c1_72, %c4_73] : memref<2x8xi32, #tpu.memory_space<smem>>
    %175 = arith.index_cast %174 : i32 to index
    %c0_74 = arith.constant 0 : index
    %176 = vector.load %arg1[%175, %c0_74] : memref<24x512xf32, #tpu.memory_space<vmem>>, vector<1x512xf32>
    %177 = tpu.concatenate %173, %176, %0 in 0 : vector<1x512xf32>, vector<1x512xf32>, vector<6x512xf32> -> vector<8x512xf32>
    %178 = arith.truncf %170 : vector<8x128xf32> to vector<8x128xbf16>
    %c0_75 = arith.constant 0 : index
    %c0_76 = arith.constant 0 : index
    %179 = vector.load %arg2[%c0_75, %c0_76] : memref<128x512xbf16, #tpu.memory_space<vmem>>, vector<128x512xbf16>
    %cst_77 = arith.constant dense<0.000000e+00> : vector<8x512xf32>
    %180 = tpu.matmul %178, %179, %cst_77 {dimension_numbers = #tpu.dot_dimension_numbers<[1], [0], [0], [1], [0, 0, 1, 1], [], []>} : vector<8x128xbf16>, vector<128x512xbf16>, vector<8x512xf32> -> vector<8x512xf32>
    %181 = arith.addf %177, %180 : vector<8x512xf32>
    %182 = vector.extract_strided_slice %181 {offsets = [0, 0], sizes = [8, 128], strides = [1, 1]} : vector<8x512xf32> to vector<8x128xf32>
    %cst_78 = arith.constant 5.000000e-01 : f32
    %183 = vector.broadcast %cst_78 : f32 to vector<8x128xf32>
    %184 = arith.mulf %183, %182 : vector<8x128xf32>
    %185 = math.tanh %184 : vector<8x128xf32>
    %cst_79 = arith.constant 5.000000e-01 : f32
    %186 = vector.broadcast %cst_79 : f32 to vector<8x128xf32>
    %187 = arith.mulf %186, %185 : vector<8x128xf32>
    %cst_80 = arith.constant 5.000000e-01 : f32
    %188 = vector.broadcast %cst_80 : f32 to vector<8x128xf32>
    %189 = arith.addf %187, %188 : vector<8x128xf32>
    %190 = vector.extract_strided_slice %181 {offsets = [0, 128], sizes = [8, 128], strides = [1, 1]} : vector<8x512xf32> to vector<8x128xf32>
    %cst_81 = arith.constant 5.000000e-01 : f32
    %191 = vector.broadcast %cst_81 : f32 to vector<8x128xf32>
    %192 = arith.mulf %191, %190 : vector<8x128xf32>
    %193 = math.tanh %192 : vector<8x128xf32>
    %cst_82 = arith.constant 5.000000e-01 : f32
    %194 = vector.broadcast %cst_82 : f32 to vector<8x128xf32>
    %195 = arith.mulf %194, %193 : vector<8x128xf32>
    %cst_83 = arith.constant 5.000000e-01 : f32
    %196 = vector.broadcast %cst_83 : f32 to vector<8x128xf32>
    %197 = arith.addf %195, %196 : vector<8x128xf32>
    %198 = vector.extract_strided_slice %181 {offsets = [0, 256], sizes = [8, 128], strides = [1, 1]} : vector<8x512xf32> to vector<8x128xf32>
    %199 = math.tanh %198 : vector<8x128xf32>
    %200 = vector.extract_strided_slice %181 {offsets = [0, 384], sizes = [8, 128], strides = [1, 1]} : vector<8x512xf32> to vector<8x128xf32>
    %cst_84 = arith.constant 5.000000e-01 : f32
    %201 = vector.broadcast %cst_84 : f32 to vector<8x128xf32>
    %202 = arith.mulf %201, %200 : vector<8x128xf32>
    %203 = math.tanh %202 : vector<8x128xf32>
    %cst_85 = arith.constant 5.000000e-01 : f32
    %204 = vector.broadcast %cst_85 : f32 to vector<8x128xf32>
    %205 = arith.mulf %204, %203 : vector<8x128xf32>
    %cst_86 = arith.constant 5.000000e-01 : f32
    %206 = vector.broadcast %cst_86 : f32 to vector<8x128xf32>
    %207 = arith.addf %205, %206 : vector<8x128xf32>
    %208 = arith.mulf %197, %168 : vector<8x128xf32>
    %209 = arith.mulf %189, %199 : vector<8x128xf32>
    %210 = arith.addf %208, %209 : vector<8x128xf32>
    %211 = math.tanh %210 : vector<8x128xf32>
    %212 = arith.mulf %207, %211 : vector<8x128xf32>
    %c0_87 = arith.constant 0 : index
    %c5 = arith.constant 5 : index
    %213 = memref.load %arg0[%c0_87, %c5] : memref<2x8xi32, #tpu.memory_space<smem>>
    %214 = arith.index_cast %213 : i32 to index
    %c0_88 = arith.constant 0 : index
    %215 = vector.load %arg1[%214, %c0_88] : memref<24x512xf32, #tpu.memory_space<vmem>>, vector<1x512xf32>
    %c1_89 = arith.constant 1 : index
    %c5_90 = arith.constant 5 : index
    %216 = memref.load %arg0[%c1_89, %c5_90] : memref<2x8xi32, #tpu.memory_space<smem>>
    %217 = arith.index_cast %216 : i32 to index
    %c0_91 = arith.constant 0 : index
    %218 = vector.load %arg1[%217, %c0_91] : memref<24x512xf32, #tpu.memory_space<vmem>>, vector<1x512xf32>
    %219 = tpu.concatenate %215, %218, %0 in 0 : vector<1x512xf32>, vector<1x512xf32>, vector<6x512xf32> -> vector<8x512xf32>
    %220 = arith.truncf %212 : vector<8x128xf32> to vector<8x128xbf16>
    %c0_92 = arith.constant 0 : index
    %c0_93 = arith.constant 0 : index
    %221 = vector.load %arg2[%c0_92, %c0_93] : memref<128x512xbf16, #tpu.memory_space<vmem>>, vector<128x512xbf16>
    %cst_94 = arith.constant dense<0.000000e+00> : vector<8x512xf32>
    %222 = tpu.matmul %220, %221, %cst_94 {dimension_numbers = #tpu.dot_dimension_numbers<[1], [0], [0], [1], [0, 0, 1, 1], [], []>} : vector<8x128xbf16>, vector<128x512xbf16>, vector<8x512xf32> -> vector<8x512xf32>
    %223 = arith.addf %219, %222 : vector<8x512xf32>
    %224 = vector.extract_strided_slice %223 {offsets = [0, 0], sizes = [8, 128], strides = [1, 1]} : vector<8x512xf32> to vector<8x128xf32>
    %cst_95 = arith.constant 5.000000e-01 : f32
    %225 = vector.broadcast %cst_95 : f32 to vector<8x128xf32>
    %226 = arith.mulf %225, %224 : vector<8x128xf32>
    %227 = math.tanh %226 : vector<8x128xf32>
    %cst_96 = arith.constant 5.000000e-01 : f32
    %228 = vector.broadcast %cst_96 : f32 to vector<8x128xf32>
    %229 = arith.mulf %228, %227 : vector<8x128xf32>
    %cst_97 = arith.constant 5.000000e-01 : f32
    %230 = vector.broadcast %cst_97 : f32 to vector<8x128xf32>
    %231 = arith.addf %229, %230 : vector<8x128xf32>
    %232 = vector.extract_strided_slice %223 {offsets = [0, 128], sizes = [8, 128], strides = [1, 1]} : vector<8x512xf32> to vector<8x128xf32>
    %cst_98 = arith.constant 5.000000e-01 : f32
    %233 = vector.broadcast %cst_98 : f32 to vector<8x128xf32>
    %234 = arith.mulf %233, %232 : vector<8x128xf32>
    %235 = math.tanh %234 : vector<8x128xf32>
    %cst_99 = arith.constant 5.000000e-01 : f32
    %236 = vector.broadcast %cst_99 : f32 to vector<8x128xf32>
    %237 = arith.mulf %236, %235 : vector<8x128xf32>
    %cst_100 = arith.constant 5.000000e-01 : f32
    %238 = vector.broadcast %cst_100 : f32 to vector<8x128xf32>
    %239 = arith.addf %237, %238 : vector<8x128xf32>
    %240 = vector.extract_strided_slice %223 {offsets = [0, 256], sizes = [8, 128], strides = [1, 1]} : vector<8x512xf32> to vector<8x128xf32>
    %241 = math.tanh %240 : vector<8x128xf32>
    %242 = vector.extract_strided_slice %223 {offsets = [0, 384], sizes = [8, 128], strides = [1, 1]} : vector<8x512xf32> to vector<8x128xf32>
    %cst_101 = arith.constant 5.000000e-01 : f32
    %243 = vector.broadcast %cst_101 : f32 to vector<8x128xf32>
    %244 = arith.mulf %243, %242 : vector<8x128xf32>
    %245 = math.tanh %244 : vector<8x128xf32>
    %cst_102 = arith.constant 5.000000e-01 : f32
    %246 = vector.broadcast %cst_102 : f32 to vector<8x128xf32>
    %247 = arith.mulf %246, %245 : vector<8x128xf32>
    %cst_103 = arith.constant 5.000000e-01 : f32
    %248 = vector.broadcast %cst_103 : f32 to vector<8x128xf32>
    %249 = arith.addf %247, %248 : vector<8x128xf32>
    %250 = arith.mulf %239, %210 : vector<8x128xf32>
    %251 = arith.mulf %231, %241 : vector<8x128xf32>
    %252 = arith.addf %250, %251 : vector<8x128xf32>
    %253 = math.tanh %252 : vector<8x128xf32>
    %254 = arith.mulf %249, %253 : vector<8x128xf32>
    %c0_104 = arith.constant 0 : index
    %c6 = arith.constant 6 : index
    %255 = memref.load %arg0[%c0_104, %c6] : memref<2x8xi32, #tpu.memory_space<smem>>
    %256 = arith.index_cast %255 : i32 to index
    %c0_105 = arith.constant 0 : index
    %257 = vector.load %arg1[%256, %c0_105] : memref<24x512xf32, #tpu.memory_space<vmem>>, vector<1x512xf32>
    %c1_106 = arith.constant 1 : index
    %c6_107 = arith.constant 6 : index
    %258 = memref.load %arg0[%c1_106, %c6_107] : memref<2x8xi32, #tpu.memory_space<smem>>
    %259 = arith.index_cast %258 : i32 to index
    %c0_108 = arith.constant 0 : index
    %260 = vector.load %arg1[%259, %c0_108] : memref<24x512xf32, #tpu.memory_space<vmem>>, vector<1x512xf32>
    %261 = tpu.concatenate %257, %260, %0 in 0 : vector<1x512xf32>, vector<1x512xf32>, vector<6x512xf32> -> vector<8x512xf32>
    %262 = arith.truncf %254 : vector<8x128xf32> to vector<8x128xbf16>
    %c0_109 = arith.constant 0 : index
    %c0_110 = arith.constant 0 : index
    %263 = vector.load %arg2[%c0_109, %c0_110] : memref<128x512xbf16, #tpu.memory_space<vmem>>, vector<128x512xbf16>
    %cst_111 = arith.constant dense<0.000000e+00> : vector<8x512xf32>
    %264 = tpu.matmul %262, %263, %cst_111 {dimension_numbers = #tpu.dot_dimension_numbers<[1], [0], [0], [1], [0, 0, 1, 1], [], []>} : vector<8x128xbf16>, vector<128x512xbf16>, vector<8x512xf32> -> vector<8x512xf32>
    %265 = arith.addf %261, %264 : vector<8x512xf32>
    %266 = vector.extract_strided_slice %265 {offsets = [0, 0], sizes = [8, 128], strides = [1, 1]} : vector<8x512xf32> to vector<8x128xf32>
    %cst_112 = arith.constant 5.000000e-01 : f32
    %267 = vector.broadcast %cst_112 : f32 to vector<8x128xf32>
    %268 = arith.mulf %267, %266 : vector<8x128xf32>
    %269 = math.tanh %268 : vector<8x128xf32>
    %cst_113 = arith.constant 5.000000e-01 : f32
    %270 = vector.broadcast %cst_113 : f32 to vector<8x128xf32>
    %271 = arith.mulf %270, %269 : vector<8x128xf32>
    %cst_114 = arith.constant 5.000000e-01 : f32
    %272 = vector.broadcast %cst_114 : f32 to vector<8x128xf32>
    %273 = arith.addf %271, %272 : vector<8x128xf32>
    %274 = vector.extract_strided_slice %265 {offsets = [0, 128], sizes = [8, 128], strides = [1, 1]} : vector<8x512xf32> to vector<8x128xf32>
    %cst_115 = arith.constant 5.000000e-01 : f32
    %275 = vector.broadcast %cst_115 : f32 to vector<8x128xf32>
    %276 = arith.mulf %275, %274 : vector<8x128xf32>
    %277 = math.tanh %276 : vector<8x128xf32>
    %cst_116 = arith.constant 5.000000e-01 : f32
    %278 = vector.broadcast %cst_116 : f32 to vector<8x128xf32>
    %279 = arith.mulf %278, %277 : vector<8x128xf32>
    %cst_117 = arith.constant 5.000000e-01 : f32
    %280 = vector.broadcast %cst_117 : f32 to vector<8x128xf32>
    %281 = arith.addf %279, %280 : vector<8x128xf32>
    %282 = vector.extract_strided_slice %265 {offsets = [0, 256], sizes = [8, 128], strides = [1, 1]} : vector<8x512xf32> to vector<8x128xf32>
    %283 = math.tanh %282 : vector<8x128xf32>
    %284 = vector.extract_strided_slice %265 {offsets = [0, 384], sizes = [8, 128], strides = [1, 1]} : vector<8x512xf32> to vector<8x128xf32>
    %cst_118 = arith.constant 5.000000e-01 : f32
    %285 = vector.broadcast %cst_118 : f32 to vector<8x128xf32>
    %286 = arith.mulf %285, %284 : vector<8x128xf32>
    %287 = math.tanh %286 : vector<8x128xf32>
    %cst_119 = arith.constant 5.000000e-01 : f32
    %288 = vector.broadcast %cst_119 : f32 to vector<8x128xf32>
    %289 = arith.mulf %288, %287 : vector<8x128xf32>
    %cst_120 = arith.constant 5.000000e-01 : f32
    %290 = vector.broadcast %cst_120 : f32 to vector<8x128xf32>
    %291 = arith.addf %289, %290 : vector<8x128xf32>
    %292 = arith.mulf %281, %252 : vector<8x128xf32>
    %293 = arith.mulf %273, %283 : vector<8x128xf32>
    %294 = arith.addf %292, %293 : vector<8x128xf32>
    %295 = math.tanh %294 : vector<8x128xf32>
    %296 = arith.mulf %291, %295 : vector<8x128xf32>
    %c0_121 = arith.constant 0 : index
    %c7 = arith.constant 7 : index
    %297 = memref.load %arg0[%c0_121, %c7] : memref<2x8xi32, #tpu.memory_space<smem>>
    %298 = arith.index_cast %297 : i32 to index
    %c0_122 = arith.constant 0 : index
    %299 = vector.load %arg1[%298, %c0_122] : memref<24x512xf32, #tpu.memory_space<vmem>>, vector<1x512xf32>
    %c1_123 = arith.constant 1 : index
    %c7_124 = arith.constant 7 : index
    %300 = memref.load %arg0[%c1_123, %c7_124] : memref<2x8xi32, #tpu.memory_space<smem>>
    %301 = arith.index_cast %300 : i32 to index
    %c0_125 = arith.constant 0 : index
    %302 = vector.load %arg1[%301, %c0_125] : memref<24x512xf32, #tpu.memory_space<vmem>>, vector<1x512xf32>
    %303 = tpu.concatenate %299, %302, %0 in 0 : vector<1x512xf32>, vector<1x512xf32>, vector<6x512xf32> -> vector<8x512xf32>
    %304 = arith.truncf %296 : vector<8x128xf32> to vector<8x128xbf16>
    %c0_126 = arith.constant 0 : index
    %c0_127 = arith.constant 0 : index
    %305 = vector.load %arg2[%c0_126, %c0_127] : memref<128x512xbf16, #tpu.memory_space<vmem>>, vector<128x512xbf16>
    %cst_128 = arith.constant dense<0.000000e+00> : vector<8x512xf32>
    %306 = tpu.matmul %304, %305, %cst_128 {dimension_numbers = #tpu.dot_dimension_numbers<[1], [0], [0], [1], [0, 0, 1, 1], [], []>} : vector<8x128xbf16>, vector<128x512xbf16>, vector<8x512xf32> -> vector<8x512xf32>
    %307 = arith.addf %303, %306 : vector<8x512xf32>
    %308 = vector.extract_strided_slice %307 {offsets = [0, 0], sizes = [8, 128], strides = [1, 1]} : vector<8x512xf32> to vector<8x128xf32>
    %cst_129 = arith.constant 5.000000e-01 : f32
    %309 = vector.broadcast %cst_129 : f32 to vector<8x128xf32>
    %310 = arith.mulf %309, %308 : vector<8x128xf32>
    %311 = math.tanh %310 : vector<8x128xf32>
    %cst_130 = arith.constant 5.000000e-01 : f32
    %312 = vector.broadcast %cst_130 : f32 to vector<8x128xf32>
    %313 = arith.mulf %312, %311 : vector<8x128xf32>
    %cst_131 = arith.constant 5.000000e-01 : f32
    %314 = vector.broadcast %cst_131 : f32 to vector<8x128xf32>
    %315 = arith.addf %313, %314 : vector<8x128xf32>
    %316 = vector.extract_strided_slice %307 {offsets = [0, 128], sizes = [8, 128], strides = [1, 1]} : vector<8x512xf32> to vector<8x128xf32>
    %cst_132 = arith.constant 5.000000e-01 : f32
    %317 = vector.broadcast %cst_132 : f32 to vector<8x128xf32>
    %318 = arith.mulf %317, %316 : vector<8x128xf32>
    %319 = math.tanh %318 : vector<8x128xf32>
    %cst_133 = arith.constant 5.000000e-01 : f32
    %320 = vector.broadcast %cst_133 : f32 to vector<8x128xf32>
    %321 = arith.mulf %320, %319 : vector<8x128xf32>
    %cst_134 = arith.constant 5.000000e-01 : f32
    %322 = vector.broadcast %cst_134 : f32 to vector<8x128xf32>
    %323 = arith.addf %321, %322 : vector<8x128xf32>
    %324 = vector.extract_strided_slice %307 {offsets = [0, 256], sizes = [8, 128], strides = [1, 1]} : vector<8x512xf32> to vector<8x128xf32>
    %325 = math.tanh %324 : vector<8x128xf32>
    %326 = vector.extract_strided_slice %307 {offsets = [0, 384], sizes = [8, 128], strides = [1, 1]} : vector<8x512xf32> to vector<8x128xf32>
    %cst_135 = arith.constant 5.000000e-01 : f32
    %327 = vector.broadcast %cst_135 : f32 to vector<8x128xf32>
    %328 = arith.mulf %327, %326 : vector<8x128xf32>
    %329 = math.tanh %328 : vector<8x128xf32>
    %cst_136 = arith.constant 5.000000e-01 : f32
    %330 = vector.broadcast %cst_136 : f32 to vector<8x128xf32>
    %331 = arith.mulf %330, %329 : vector<8x128xf32>
    %cst_137 = arith.constant 5.000000e-01 : f32
    %332 = vector.broadcast %cst_137 : f32 to vector<8x128xf32>
    %333 = arith.addf %331, %332 : vector<8x128xf32>
    %334 = arith.mulf %323, %294 : vector<8x128xf32>
    %335 = arith.mulf %315, %325 : vector<8x128xf32>
    %336 = arith.addf %334, %335 : vector<8x128xf32>
    %337 = math.tanh %336 : vector<8x128xf32>
    %338 = arith.mulf %333, %337 : vector<8x128xf32>
    %339 = arith.truncf %338 : vector<8x128xf32> to vector<8x128xbf16>
    %c0_138 = arith.constant 0 : index
    %c0_139 = arith.constant 0 : index
    %340 = vector.load %arg3[%c0_138, %c0_139] : memref<128x128xbf16, #tpu.memory_space<vmem>>, vector<128x128xbf16>
    %cst_140 = arith.constant dense<0.000000e+00> : vector<8x128xf32>
    %341 = tpu.matmul %339, %340, %cst_140 {dimension_numbers = #tpu.dot_dimension_numbers<[1], [0], [0], [1], [0, 0, 1, 1], [], []>} : vector<8x128xbf16>, vector<128x128xbf16>, vector<8x128xf32> -> vector<8x128xf32>
    %c0_141 = arith.constant 0 : index
    %c0_142 = arith.constant 0 : index
    %342 = vector.load %arg4[%c0_141, %c0_142] : memref<1x128xf32, #tpu.memory_space<vmem>>, vector<1x128xf32>
    %343 = vector.broadcast %342 : vector<1x128xf32> to vector<8x128xf32>
    %344 = arith.addf %341, %343 : vector<8x128xf32>
    %c0_143 = arith.constant 0 : index
    %c0_144 = arith.constant 0 : index
    %345 = vector.load %arg5[%c0_143, %c0_144] : memref<8x128xf32, #tpu.memory_space<vmem>>, vector<8x128xf32>
    tpu.vector_store %arg5[%c0_143, %c0_144], %344 {strides = array<i32>} : memref<8x128xf32, #tpu.memory_space<vmem>>, vector<8x128xf32>,
    return
  }
}

</mosaic_0001>

<bundles_post_ra>
// kernel: tpu_custom_call.1
= control target key start
LH: loop header
LB: loop body
LE: loop exit
PB: predicated region body
PF: predicated region fallthrough
CT: control target
= control target key end

     0   :  { %10 = vsyncpa [#allocation5], 0  ;;  %s2939_s0 = inlined_call_operand.hbm [shape: s32[2,8], index: 0, kind: input, shape index: {}]   ;;  %s2940_s1 = inlined_call_operand.hbm [shape: f32[24,512], index: 1, kind: input, shape index: {}]   ;;  %s2941_s2 = inlined_call_operand.hbm [shape: bf16[128,512], index: 2, kind: input, shape index: {}]   ;;  %s2942_s3 = inlined_call_operand.hbm [shape: bf16[128,128], index: 3, kind: input, shape index: {}]   ;;  %s2943_s4 = inlined_call_operand.vmem [shape: f32[1,128], index: 4, kind: input, shape index: {}]   ;;  %s2944_s5 = inlined_call_operand.hbm [shape: f32[8,128], index: 5, kind: output, shape index: {}]  }
   0x1   :  { %11 = vsyncpa [#allocation3], 0 }
   0x2   :  { %12 = vsyncpa [#allocation8], 0 }
   0x3   :  { %13 = vsyncpa [#allocation4], 0  ;;  %s2266_s18 = smov [#allocation7]   ;;  %s2160_s22 = scalar_lea.hbm %s2941_s2, 4096 }
   0x4   :  { %s39_s19 = sshll.u32 %s2266_s18, 4  ;;  %p2161_p0 = scmp.ne.s32.totalorder %s2941_s2, %s2160_s22  ;;  %s40_s19 = int_to_ptr.vmem [resolvable:$true] %s39_s19 }
   0x5   :  { %p2164_p1 = scmp.lt.u32.totalorder %s2160_s22, %s2941_s2 }
   0x7   :  { %p2166_p2 = pnand %p2164_p1, %p2161_p0 }
   0x9   :  { %2169 = shalt.err (!%p2166_p2)
}
   0xa   :  { %s2170_s27 = scalar_lea.vmem %s40_s19, 4096  ;;  %p2175_p4 = scmp.lt.s32.totalorder %s40_s19, %s40_s19 }
   0xb   :  { %p2171_p3 = scmp.ne.s32.totalorder %s40_s19, %s2170_s27  ;;  %p2176_p5 = scmp.lt.s32.totalorder %s2170_s27, %s2170_s27 }
   0xd   :  { %p2177_p6 = por %p2176_p5, %p2175_p4 }
   0xf   :  { %p2178_p7 = pnand %p2177_p6, %p2171_p3 }
  0x11   :  { %2181 = shalt.err (!%p2178_p7)
}
  0x12   :  { %s2267_s28 = smov 256   ;;  %s2268_s29 = smov 16  }
  0x13   :  { %45 = dma.hbm_to_vmem [thread:$0]  %s2941_s2, 4096, %s40_s19, [#allocation8], %s2267_s28, %s2267_s28, %s2268_s29  }
  0x14   :  { %s2182_s9 = scalar_lea.hbm %s2939_s0, 32 }
  0x15   :  { %p2183_p8 = scmp.ne.s32.totalorder %s2939_s0, %s2182_s9  ;;  %p2186_p9 = scmp.lt.u32.totalorder %s2182_s9, %s2939_s0 }
  0x17   :  { %p2188_p10 = pnand %p2186_p9, %p2183_p8 }
  0x19   :  { %2191 = shalt.err (!%p2188_p10)
}
  0x1a   :  { %s2269_s14 = smov [#allocation2]   ;;  %s2270_s2 = smov [#allocation6]  }
  0x1b   :  { %21 = dma.hbm_to_smem %s2939_s0, 32, %s2269_s14, [#allocation5]  }
  0x1c   :  { %s27_s17 = sshll.u32 %s2270_s2, 4  ;;  %s2192_s20 = scalar_lea.hbm %s2940_s1, 1536  ;;  %s28_s17 = int_to_ptr.vmem [resolvable:$true] %s27_s17 }
  0x1d   :  { %p2193_p11 = scmp.ne.s32.totalorder %s2940_s1, %s2192_s20  ;;  %p2196_p12 = scmp.lt.u32.totalorder %s2192_s20, %s2940_s1 }
  0x1f   :  { %p2198_p13 = pnand %p2196_p12, %p2193_p11 }
  0x21   :  { %2201 = shalt.err (!%p2198_p13)
}
  0x22   :  { %s2202_s25 = scalar_lea.vmem %s28_s17, 1536  ;;  %p2207_p1 = scmp.lt.s32.totalorder %s28_s17, %s28_s17 }
  0x23   :  { %p2203_p0 = scmp.ne.s32.totalorder %s28_s17, %s2202_s25  ;;  %p2208_p2 = scmp.lt.s32.totalorder %s2202_s25, %s2202_s25 }
  0x25   :  { %p2209_p3 = por %p2208_p2, %p2207_p1 }
  0x27   :  { %p2210_p4 = pnand %p2209_p3, %p2203_p0 }
  0x29   :  { %2213 = shalt.err (!%p2210_p4)
}
  0x2a   :  { %s2271_s0 = smov 512   ;;  %s2272_s26 = smov 32  }
  0x2b   :  { %33 = dma.hbm_to_vmem [thread:$0]  %s2940_s1, 1536, %s28_s17, [#allocation3], %s2271_s0, %s2271_s0, %s2272_s26  }
  0x2c   :  { %s2273_s29 = smov [#allocation9]   ;;  %s2214_s8 = scalar_lea.hbm %s2942_s3, 1024 }
  0x2d   :  { %s51_s30 = sshll.u32 %s2273_s29, 4  ;;  %p2215_p5 = scmp.ne.s32.totalorder %s2942_s3, %s2214_s8  ;;  %s52_s30 = int_to_ptr.vmem [resolvable:$true] %s51_s30 }
  0x2e   :  { %p2218_p6 = scmp.lt.u32.totalorder %s2214_s8, %s2942_s3 }
  0x30   :  { %p2220_p7 = pnand %p2218_p6, %p2215_p5 }
  0x32   :  { %2223 = shalt.err (!%p2220_p7)
}
  0x33   :  { %s2224_s13 = scalar_lea.vmem %s52_s30, 1024  ;;  %p2229_p9 = scmp.lt.s32.totalorder %s52_s30, %s52_s30 }
  0x34   :  { %p2225_p8 = scmp.ne.s32.totalorder %s52_s30, %s2224_s13  ;;  %p2230_p10 = scmp.lt.s32.totalorder %s2224_s13, %s2224_s13 }
  0x36   :  { %p2231_p11 = por %p2230_p10, %p2229_p9 }
  0x38   :  { %p2232_p12 = pnand %p2231_p11, %p2225_p8 }
  0x3a   :  { %2235 = shalt.err (!%p2232_p12)
}
  0x3b   :  { %s2274_s1 = smov 64   ;;  %s2275_s14 = smov 4  }
  0x3c   :  { %57 = dma.hbm_to_vmem [thread:$0]  %s2942_s3, 1024, %s52_s30, [#allocation8], %s2274_s1, %s2274_s1, %s2275_s14  }
  0x3d   :  { %2258 = dma.done.wait [#allocation5], 32  }
  0x3e   :  { %2259 = vsyncadd [#allocation5], 4294967264 }
  0x3f   :  { %2260 = dma.done.wait [#allocation3], 1536  }
  0x40   :  { %2261 = vsyncadd [#allocation3], 4294965760 }
  0x41   :  { %2262 = dma.done.wait [#allocation8], 5120  }
  0x42   :  { %2263 = vsyncadd [#allocation8], 4294962176 }
  0x43   :  { %72 = sfence }
  0x44   :  { %v2358_v0 = vld [vmem:[#allocation7 + $0x4] ss:$16 sps:$4 sm:$0xff]   ;;  %v2360_v1 = vld [vmem:[#allocation7] ss:$16 sps:$4 sm:$0xff]   ;;  %v2276_v2 = vmov 0   ;;  %s74_s3 = sld [smem:[#allocation2]]  ;;  %v95_v33 = vlaneseq }
  0x45   :  { %370 = vmatprep.mubr.bf16.mxu0 %v2276_v2  ;;  %411 = vmatprep.mubr.bf16.mxu1 %v2276_v2  ;;  %v2365_v3 = vld [vmem:[#allocation7 + $0x24] ss:$16 sps:$4 sm:$0xff]   ;;  %v2368_v4 = vld [vmem:[#allocation7 + $0xc] ss:$16 sps:$4 sm:$0xff]   ;;  %v2370_v5 = vld [vmem:[#allocation7 + $0x20] ss:$16 sps:$4 sm:$0xff]  }
  0x46   :  { %338 = vmatprep.subr.bf16.mxu0 %v2358_v0  ;;  %v2372_v6 = vld [vmem:[#allocation7 + $0x8] ss:$16 sps:$4 sm:$0xff]   ;;  %v2375_v7 = vld [vmem:[#allocation7 + $0x44] ss:$16 sps:$4 sm:$0xff]   ;;  %379 = vmatprep.subr.bf16.mxu1 %v2368_v4  ;;  %v2378_v8 = vld [vmem:[#allocation7 + $0x2c] ss:$16 sps:$4 sm:$0xff]  }
  0x47   :  { %339 = vmatpush1.bf16.msra.mxu0 %v2360_v1  ;;  %380 = vmatpush1.bf16.msra.mxu1 %v2372_v6  ;;  %v2381_v9 = vld [vmem:[#allocation7 + $0x28] ss:$16 sps:$4 sm:$0xff]   ;;  %v2385_v10 = vld [vmem:[#allocation7 + $0x40] ss:$16 sps:$4 sm:$0xff]   ;;  %v2388_v11 = vld [vmem:[#allocation7 + $0x64] ss:$16 sps:$4 sm:$0xff]  }
  0x48   :  { %340 = vmatprep.subr.bf16.mxu0 %v2365_v3  ;;  %381 = vmatprep.subr.bf16.mxu1 %v2378_v8  ;;  %v2390_v12 = vld [vmem:[#allocation7 + $0x4c] ss:$16 sps:$4 sm:$0xff]   ;;  %v2393_v13 = vld [vmem:[#allocation7 + $0x48] ss:$16 sps:$4 sm:$0xff]   ;;  %v2397_v14 = vld [vmem:[#allocation7 + $0x60] ss:$16 sps:$4 sm:$0xff]  }
  0x49   :  { %v2399_v15 = vld [vmem:[#allocation7 + $0x6c] ss:$16 sps:$4 sm:$0xff]   ;;  %v2402_v16 = vld [vmem:[#allocation7 + $0x84] ss:$16 sps:$4 sm:$0xff]   ;;  %v2405_v17 = vld [vmem:[#allocation7 + $0x80] ss:$16 sps:$4 sm:$0xff]  }
  0x4a   :  { %v2407_v18 = vld [vmem:[#allocation7 + $0x68] ss:$16 sps:$4 sm:$0xff]   ;;  %v2411_v19 = vld [vmem:[#allocation7 + $0x8c] ss:$16 sps:$4 sm:$0xff]   ;;  %v2414_v20 = vld [vmem:[#allocation7 + $0xa4] ss:$16 sps:$4 sm:$0xff]  }
  0x4b   :  { %341 = vmatpush1.bf16.msra.mxu0 %v2370_v5  ;;  %382 = vmatpush1.bf16.msra.mxu1 %v2381_v9  ;;  %v2417_v21 = vld [vmem:[#allocation7 + $0x88] ss:$16 sps:$4 sm:$0xff]   ;;  %v2421_v22 = vld [vmem:[#allocation7 + $0xa0] ss:$16 sps:$4 sm:$0xff]   ;;  %v2423_v23 = vld [vmem:[#allocation7 + $0xac] ss:$16 sps:$4 sm:$0xff]  }
  0x4c   :  { %342 = vmatprep.subr.bf16.mxu0 %v2375_v7  ;;  %383 = vmatprep.subr.bf16.mxu1 %v2390_v12  ;;  %v2426_v24 = vld [vmem:[#allocation7 + $0xc4] ss:$16 sps:$4 sm:$0xff]   ;;  %v2428_v25 = vld [vmem:[#allocation7 + $0xc0] ss:$16 sps:$4 sm:$0xff]   ;;  %v2430_v26 = vld [vmem:[#allocation7 + $0xa8] ss:$16 sps:$4 sm:$0xff]  }
  0x4d   :  { %v2433_v27 = vld [vmem:[#allocation7 + $0xe4] ss:$16 sps:$4 sm:$0xff]   ;;  %v2435_v28 = vld [vmem:[#allocation7 + $0xcc] ss:$16 sps:$4 sm:$0xff]   ;;  %v2440_v29 = vld [vmem:[#allocation7 + $0xc8] ss:$16 sps:$4 sm:$0xff]  }
  0x4e   :  { %v2442_v30 = vld [vmem:[#allocation7 + $0xe0] ss:$16 sps:$4 sm:$0xff]   ;;  %v2445_v31 = vld [vmem:[#allocation7 + $0xec] ss:$16 sps:$4 sm:$0xff]   ;;  %v2451_v32 = vld [vmem:[#allocation7 + $0xe8] ss:$16 sps:$4 sm:$0xff]  }
  0x4f   :  { %343 = vmatpush1.bf16.msra.mxu0 %v2385_v10  ;;  %384 = vmatpush1.bf16.msra.mxu1 %v2393_v13  ;;  %s1847_s2 = sld [smem:[#allocation2 + $0x80]]  ;;  %s75_s17 = sshra.s32 %s74_s3, 3  ;;  %v96_v34 = vshrl.u32 %v95_v33, 7  ;;  %vm136_vm0 = vcmask 1040384   ;;  %vm141_vm1 = vcmask 1041408   ;;  %vm2278_vm2 = vmmov 0  }
  0x50   :  { %344 = vmatprep.subr.bf16.mxu0 %v2388_v11  ;;  %385 = vmatprep.subr.bf16.mxu1 %v2399_v15  ;;  %s78_s19 = sand.u32 7, %s74_s3  ;;  %s1933_s20 = sshll.u32 %s75_s17, 5 }
  0x51   :  { %s81_s23 = sadd.s32 %s1933_s20, %s78_s19  ;;  %v2494_v36 = vsub.s32 0, %v96_v34  ;;  %v2496_v38 = vsub.s32 1, %v96_v34  ;;  %v2498_v39 = vsub.s32 2, %v96_v34  ;;  %v2507_v47 = vsub.s32 3, %v96_v34  ;;  %s1882_s26 = sld [smem:[#allocation2 + $0x1]] }
  0x52   :  { %s82_s25 = scalar_lea.vmem [#allocation6], %s81_s23  ;;  %s1885_s27 = sld [smem:[#allocation2 + $0x81]] }
  0x53   :  { %345 = vmatpush1.bf16.msra.mxu0 %v2397_v14  ;;  %386 = vmatpush1.bf16.msra.mxu1 %v2407_v18  ;;  %v83_v35 = vld [vmem:[%s82_s25] ss:$8 sm:$0xf]  ;;  %s1888_s13 = sld [smem:[#allocation2 + $0x2]]  ;;  %s1897_s23 = sld [smem:[#allocation2 + $0x83]] }
  0x54   :  { %346 = vmatprep.subr.bf16.mxu0 %v2402_v16  ;;  %387 = vmatprep.subr.bf16.mxu1 %v2411_v19  ;;  %v98_v40 = vrot.slane %v83_v35, %v2494_v36  ;;  %v102_v42 = vrot.slane %v83_v35, %v2496_v38  ;;  %v106_v44 = vrot.slane %v83_v35, %v2498_v39  ;;  %s1891_s1 = sld [smem:[#allocation2 + $0x82]] }
  0x55   :  { %s85_s18 = sshra.s32 %s1847_s2, 3  ;;  %s88_s21 = sand.u32 7, %s1847_s2  ;;  %v110_v52 = vrot.slane %v83_v35, %v2507_v47 }
  0x56   :  { %s1934_s22 = sshll.u32 %s85_s18, 5 }
  0x57   :  { %347 = vmatpush1.bf16.msra.mxu0 %v2405_v17  ;;  %388 = vmatpush1.bf16.msra.mxu1 %v2417_v21  ;;  %s91_s24 = sadd.s32 %s1934_s22, %s88_s21  ;;  %s443_s28 = sshra.s32 %s1882_s26, 3 }
  0x58   :  { %348 = vmatprep.subr.bf16.mxu0 %v2414_v20  ;;  %389 = vmatprep.subr.bf16.mxu1 %v2423_v23  ;;  %s92_s0 = scalar_lea.vmem [#allocation6], %s91_s24  ;;  %s453_s29 = sshra.s32 %s1885_s27, 3 }
  0x59   :  { %v93_v37 = vld [vmem:[%s92_s0] ss:$8 sm:$0xf]  ;;  %s446_s30 = sand.u32 7, %s1882_s26  ;;  %s1935_s6 = sshll.u32 %s443_s28, 5 }
  0x5a   :  { %v119_v41 = vrot.slane %v93_v37, %v2494_v36  ;;  %v123_v43 = vrot.slane %v93_v37, %v2496_v38  ;;  %v127_v45 = vrot.slane %v93_v37, %v2498_v39  ;;  %v131_v53 = vrot.slane %v93_v37, %v2507_v47  ;;  %s456_s7 = sand.u32 7, %s1885_s27  ;;  %s1936_s8 = sshll.u32 %s453_s29, 5 }
  0x5b   :  { %349 = vmatpush1.bf16.msra.mxu0 %v2421_v22  ;;  %390 = vmatpush1.bf16.msra.mxu1 %v2430_v26  ;;  %s449_s9 = sadd.s32 %s1935_s6, %s446_s30  ;;  %s459_s10 = sadd.s32 %s1936_s8, %s456_s7 }
  0x5c   :  { %350 = vmatprep.subr.bf16.mxu0 %v2426_v24  ;;  %391 = vmatprep.subr.bf16.mxu1 %v2435_v28  ;;  %v137_v46 = vsel %vm136_vm0, %v98_v40, %v119_v41  ;;  %v138_v48 = vsel %vm136_vm0, %v102_v42, %v123_v43  ;;  %v139_v50 = vsel %vm136_vm0, %v106_v44, %v127_v45  ;;  %s450_s11 = scalar_lea.vmem [#allocation6], %s449_s9  ;;  %s460_s12 = scalar_lea.vmem [#allocation6], %s459_s10 }
  0x5d   :  { %v142_v49 = vsel %vm141_vm1, %v137_v46, 0.0  ;;  %v143_v51 = vsel %vm141_vm1, %v138_v48, 0.0  ;;  %v144_v57 = vsel %vm141_vm1, %v139_v50, 0.0  ;;  %v140_v63 = vsel %vm136_vm0, %v110_v52, %v131_v53  ;;  %s618_s14 = sshra.s32 %s1888_s13, 3  ;;  %s628_s15 = sshra.s32 %s1891_s1, 3 }
  0x5e   :  { %v145_v35 = vsel %vm141_vm1, %v140_v63, 0.0  ;;  %s621_s16 = sand.u32 7, %s1888_s13  ;;  %s1937_s3 = sshll.u32 %s618_s14, 5 }
  0x5f   :  { %351 = vmatpush1.bf16.msra.mxu0 %v2428_v25  ;;  %392 = vmatpush1.bf16.msra.mxu1 %v2440_v29  ;;  %s631_s2 = sand.u32 7, %s1891_s1  ;;  %s1938_s17 = sshll.u32 %s628_s15, 5 }
  0x60   :  { %352 = vmatprep.subr.bf16.mxu0 %v2433_v27  ;;  %393 = vmatprep.subr.bf16.mxu1 %v2445_v31  ;;  %s624_s18 = sadd.s32 %s1937_s3, %s621_s16  ;;  %s634_s19 = sadd.s32 %s1938_s17, %s631_s2 }
  0x61   :  { %s625_s20 = scalar_lea.vmem [#allocation6], %s624_s18  ;;  %s635_s21 = scalar_lea.vmem [#allocation6], %s634_s19 }
  0x62   :  { %s1894_s22 = sld [smem:[#allocation2 + $0x3]]  ;;  %s803_s25 = sshra.s32 %s1897_s23, 3 }
  0x63   :  { %353 = vmatpush1.bf16.msra.mxu0 %v2442_v30  ;;  %394 = vmatpush1.bf16.msra.mxu1 %v2451_v32  ;;  %s806_s27 = sand.u32 7, %s1897_s23  ;;  %s1940_s28 = sshll.u32 %s803_s25, 5 }
  0x64   :  { %513 = vmatprep.subr.bf16.mxu0 %v2358_v0  ;;  %554 = vmatprep.subr.bf16.mxu1 %v2368_v4  ;;  %s809_s30 = sadd.s32 %s1940_s28, %s806_s27  ;;  %s1900_s8 = sld [smem:[#allocation2 + $0x4]] }
  0x65   :  { %s810_s7 = scalar_lea.vmem [#allocation6], %s809_s30  ;;  %s1903_s9 = sld [smem:[#allocation2 + $0x84]] }
  0x66   :  { %371 = vmatmul.mubr.bf16.vlgmr.msra.gmra.mrb[0].mxu0 %v2276_v2  ;;  %412 = vmatmul.mubr.bf16.vlgmr.msra.gmra.mrb[0].mxu1 %v2276_v2  ;;  %s1906_s17 = sld [smem:[#allocation2 + $0x5]]  ;;  %s1912_s28 = sld [smem:[#allocation2 + $0x6]] }
  0x67   :  { %514 = vmatpush1.bf16.msra.mxu0 %v2360_v1  ;;  %545 = vmatprep.mubr.bf16.mxu0 %v2276_v2  ;;  %s1909_s18 = sld [smem:[#allocation2 + $0x85]] }
  0x68   :  { %515 = vmatprep.subr.bf16.mxu0 %v2365_v3  ;;  %555 = vmatpush1.bf16.msra.mxu1 %v2372_v6  ;;  %s793_s24 = sshra.s32 %s1894_s22, 3  ;;  %s796_s0 = sand.u32 7, %s1894_s22 }
  0x69   :  { %586 = vmatprep.mubr.bf16.mxu1 %v2276_v2  ;;  %556 = vmatprep.subr.bf16.mxu1 %v2378_v8  ;;  %s1939_s26 = sshll.u32 %s793_s24, 5 }
  0x6a   :  { %s799_s29 = sadd.s32 %s1939_s26, %s796_s0  ;;  %s968_s10 = sshra.s32 %s1900_s8, 3 }
  0x6b   :  { %516 = vmatpush1.bf16.msra.mxu0 %v2370_v5  ;;  %s800_s6 = scalar_lea.vmem [#allocation6], %s799_s29  ;;  %s1941_s13 = sshll.u32 %s968_s10, 5 }
  0x6c   :  { %517 = vmatprep.subr.bf16.mxu0 %v2375_v7  ;;  %557 = vmatpush1.bf16.msra.mxu1 %v2381_v9  ;;  %s981_s1 = sand.u32 7, %s1903_s9  ;;  %s1143_s19 = sshra.s32 %s1906_s17, 3 }
  0x6d   :  { %558 = vmatprep.subr.bf16.mxu1 %v2390_v12  ;;  %s1943_s22 = sshll.u32 %s1143_s19, 5  ;;  %s1156_s23 = sand.u32 7, %s1909_s18 }
  0x6e   :  { %s1915_s29 = sld [smem:[#allocation2 + $0x86]]  ;;  %s1318_s30 = sshra.s32 %s1912_s28, 3 }
  0x6f   :  { %518 = vmatpush1.bf16.msra.mxu0 %v2385_v10 }
  0x70   :  { %519 = vmatprep.subr.bf16.mxu0 %v2388_v11  ;;  %559 = vmatpush1.bf16.msra.mxu1 %v2393_v13 }
  0x71   :  { %560 = vmatprep.subr.bf16.mxu1 %v2399_v15 }
  0x73   :  { %520 = vmatpush1.bf16.msra.mxu0 %v2397_v14 }
  0x74   :  { %521 = vmatprep.subr.bf16.mxu0 %v2402_v16  ;;  %561 = vmatpush1.bf16.msra.mxu1 %v2407_v18 }
  0x75   :  { %562 = vmatprep.subr.bf16.mxu1 %v2411_v19 }
  0x77   :  { %522 = vmatpush1.bf16.msra.mxu0 %v2405_v17 }
  0x78   :  { %523 = vmatprep.subr.bf16.mxu0 %v2414_v20  ;;  %563 = vmatpush1.bf16.msra.mxu1 %v2417_v21 }
  0x79   :  { %564 = vmatprep.subr.bf16.mxu1 %v2423_v23 }
  0x7b   :  { %524 = vmatpush1.bf16.msra.mxu0 %v2421_v22 }
  0x7c   :  { %525 = vmatprep.subr.bf16.mxu0 %v2426_v24  ;;  %565 = vmatpush1.bf16.msra.mxu1 %v2430_v26 }
  0x7d   :  { %566 = vmatprep.subr.bf16.mxu1 %v2435_v28 }
  0x7f   :  { %526 = vmatpush1.bf16.msra.mxu0 %v2428_v25 }
  0x80   :  { %527 = vmatprep.subr.bf16.mxu0 %v2433_v27  ;;  %567 = vmatpush1.bf16.msra.mxu1 %v2440_v29 }
  0x81   :  { %568 = vmatprep.subr.bf16.mxu1 %v2445_v31 }
  0x83   :  { %528 = vmatpush1.bf16.msra.mxu0 %v2442_v30 }
  0x84   :  { %688 = vmatprep.subr.bf16.mxu0 %v2358_v0  ;;  %569 = vmatpush1.bf16.msra.mxu1 %v2451_v32 }
  0x85   :  { %729 = vmatprep.subr.bf16.mxu1 %v2368_v4 }
 0x139   :  { %v372_v54 = vpop.f32.mrb[0].mxu0  ;;  %v413_v62 = vpop.f32.mrb[0].mxu1 }
 0x13a   :  { %v420_v55 = vadd.f32 %v372_v54, %v142_v49  ;;  %v374_v56 = vpop.f32.mrb[1].mxu0  ;;  %v422_v34 = vadd.f32 %v413_v62, %v144_v57  ;;  %v415_v40 = vpop.f32.mrb[1].mxu1  ;;  %v461_v62 = vld [vmem:[%s460_s12] ss:$8 sm:$0xf]  ;;  %s971_s12 = sand.u32 7, %s1900_s8 }
 0x13b   :  { %v421_v58 = vadd.f32 %v374_v56, %v143_v51  ;;  %v376_v59 = vpop.f32.mrb[2].mxu0  ;;  %v417_v41 = vpop.f32.mrb[2].mxu1  ;;  %v423_v42 = vadd.f32 %v415_v40, %v145_v35  ;;  %v491_v40 = vrot.slane %v461_v62, %v2496_v38  ;;  %s974_s15 = sadd.s32 %s1941_s13, %s971_s12  ;;  %s1945_s8 = sshll.u32 %s1318_s30, 5 }
 0x13c   :  { %v424_v60 = vmul.f32 0.5, %v420_v55  ;;  %v377_v61 = vpop.f32.mrb[3].mxu0  ;;  %v418_v37 = vpop.f32.mrb[3].mxu1  ;;  %s975_s3 = scalar_lea.vmem [#allocation6], %s974_s15  ;;  %s1921_s15 = sld [smem:[#allocation2 + $0x87]] }
 0x13d   :  { %v428_v33 = vmul.f32 0.5, %v421_v58  ;;  %v433_v43 = vmul.f32 0.5, %v423_v42  ;;  %v451_v61 = vld [vmem:[%s450_s11] ss:$8 sm:$0xf]  ;;  %v495_v37 = vrot.slane %v461_v62, %v2498_v39  ;;  %s978_s11 = sshra.s32 %s1903_s9, 3 }
 0x13e   :  { %2048 = vtanh.f32 %v424_v60  ;;  %v466_v63 = vrot.slane %v451_v61, %v2494_v36  ;;  %v474_v35 = vrot.slane %v451_v61, %v2498_v39  ;;  %s1942_s14 = sshll.u32 %s978_s11, 5  ;;  %s1331_s9 = sand.u32 7, %s1915_s29 }
 0x13f   :  { %2050 = vtanh.f32 %v428_v33  ;;  %v487_v33 = vrot.slane %v461_v62, %v2494_v36  ;;  %s984_s16 = sadd.s32 %s1942_s14, %s981_s1  ;;  %s1918_s14 = sld [smem:[#allocation2 + $0x7]] }
 0x140   :  { %2052 = vtanh.f32 %v422_v34  ;;  %v470_v34 = vrot.slane %v451_v61, %v2496_v38  ;;  %s985_s2 = scalar_lea.vmem [#allocation6], %s984_s16 }
 0x141   :  { %2054 = vtanh.f32 %v433_v43  ;;  %v504_v41 = vsel %vm136_vm0, %v466_v63, %v487_v33 }
 0x142   :  { %v505_v42 = vsel %vm136_vm0, %v470_v34, %v491_v40  ;;  %v508_v43 = vsel %vm141_vm1, %v504_v41, 0.0 }
 0x145   :  { %s1493_s16 = sshra.s32 %s1918_s14, 3 }
 0x148   :  { %v2049_v44 = vpop.eup %2048 }
 0x149   :  { %v2051_v45 = vpop.eup %2050  ;;  %v426_v46 = vmul.f32 0.5, %v2049_v44  ;;  %v506_v44 = vsel %vm136_vm0, %v474_v35, %v495_v37 }
 0x14a   :  { %v2053_v48 = vpop.eup %2052  ;;  %v430_v49 = vmul.f32 0.5, %v2051_v45  ;;  %v509_v45 = vsel %vm141_vm1, %v505_v42, 0.0 }
 0x14b   :  { %v427_v50 = vadd.f32 0.5, %v426_v46  ;;  %v2055_v55 = vpop.eup %2054  ;;  %v478_v46 = vrot.slane %v451_v61, %v2507_v47 }
 0x14c   :  { %v431_v51 = vadd.f32 0.5, %v430_v49  ;;  %v435_v56 = vmul.f32 0.5, %v2055_v55  ;;  %v510_v55 = vsel %vm141_vm1, %v506_v44, 0.0 }
 0x14d   :  { %v438_v52 = vmul.f32 %v2053_v48, %v427_v50  ;;  %v499_v48 = vrot.slane %v461_v62, %v2507_v47 }
 0x14e   :  { %v437_v53 = vmul.f32 0.0, %v431_v51  ;;  %v436_v57 = vadd.f32 0.5, %v435_v56 }
 0x150   :  { %v2518_v54 = vadd.f32 %v438_v52, %v437_v53 }
 0x152   :  { %2056 = vtanh.f32 %v2518_v54 }
 0x15c   :  { %v2057_v58 = vpop.eup %2056 }
 0x15d   :  { %v441_v59 = vmul.f32 %v2057_v58, %v436_v57 }
 0x15f   :  { %v512_v60 = vpack.c.bf16 %v441_v59, %v441_v59 }
 0x161   :  { %546 = vmatmul.mubr.bf16.vlgmr.msra.gmra.mrb[4].mxu0 %v512_v60  ;;  %587 = vmatmul.mubr.bf16.vlgmr.msra.gmra.mrb[4].mxu1 %v512_v60  ;;  %v507_v60 = vsel %vm136_vm0, %v478_v46, %v499_v48 }
 0x162   :  { %689 = vmatpush1.bf16.msra.mxu0 %v2360_v1  ;;  %730 = vmatpush1.bf16.msra.mxu1 %v2372_v6  ;;  %v511_v62 = vsel %vm141_vm1, %v507_v60, 0.0 }
 0x163   :  { %690 = vmatprep.subr.bf16.mxu0 %v2365_v3  ;;  %731 = vmatprep.subr.bf16.mxu1 %v2378_v8 }
 0x164   :  { %720 = vmatprep.mubr.bf16.mxu0 %v2276_v2  ;;  %761 = vmatprep.mubr.bf16.mxu1 %v2276_v2 }
 0x166   :  { %691 = vmatpush1.bf16.msra.mxu0 %v2370_v5  ;;  %732 = vmatpush1.bf16.msra.mxu1 %v2381_v9 }
 0x167   :  { %692 = vmatprep.subr.bf16.mxu0 %v2375_v7  ;;  %733 = vmatprep.subr.bf16.mxu1 %v2390_v12 }
 0x16a   :  { %693 = vmatpush1.bf16.msra.mxu0 %v2385_v10  ;;  %734 = vmatpush1.bf16.msra.mxu1 %v2393_v13 }
 0x16b   :  { %694 = vmatprep.subr.bf16.mxu0 %v2388_v11  ;;  %735 = vmatprep.subr.bf16.mxu1 %v2399_v15 }
 0x16e   :  { %695 = vmatpush1.bf16.msra.mxu0 %v2397_v14  ;;  %736 = vmatpush1.bf16.msra.mxu1 %v2407_v18 }
 0x16f   :  { %696 = vmatprep.subr.bf16.mxu0 %v2402_v16  ;;  %737 = vmatprep.subr.bf16.mxu1 %v2411_v19 }
 0x172   :  { %697 = vmatpush1.bf16.msra.mxu0 %v2405_v17  ;;  %738 = vmatpush1.bf16.msra.mxu1 %v2417_v21 }
 0x173   :  { %698 = vmatprep.subr.bf16.mxu0 %v2414_v20  ;;  %739 = vmatprep.subr.bf16.mxu1 %v2423_v23 }
 0x176   :  { %699 = vmatpush1.bf16.msra.mxu0 %v2421_v22  ;;  %740 = vmatpush1.bf16.msra.mxu1 %v2430_v26 }
 0x177   :  { %700 = vmatprep.subr.bf16.mxu0 %v2426_v24  ;;  %741 = vmatprep.subr.bf16.mxu1 %v2435_v28 }
 0x17a   :  { %701 = vmatpush1.bf16.msra.mxu0 %v2428_v25  ;;  %742 = vmatpush1.bf16.msra.mxu1 %v2440_v29 }
 0x17b   :  { %702 = vmatprep.subr.bf16.mxu0 %v2433_v27  ;;  %743 = vmatprep.subr.bf16.mxu1 %v2445_v31 }
 0x17e   :  { %703 = vmatpush1.bf16.msra.mxu0 %v2442_v30  ;;  %744 = vmatpush1.bf16.msra.mxu1 %v2451_v32 }
 0x17f   :  { %863 = vmatprep.subr.bf16.mxu0 %v2358_v0  ;;  %904 = vmatprep.subr.bf16.mxu1 %v2368_v4 }
 0x234   :  { %v547_v49 = vpop.f32.mrb[4].mxu0  ;;  %v588_v50 = vpop.f32.mrb[4].mxu1 }
 0x235   :  { %v595_v51 = vadd.f32 %v547_v49, %v508_v43  ;;  %v549_v52 = vpop.f32.mrb[5].mxu0  ;;  %v590_v53 = vpop.f32.mrb[5].mxu1  ;;  %v597_v61 = vadd.f32 %v588_v50, %v510_v55 }
 0x236   :  { %v596_v56 = vadd.f32 %v549_v52, %v509_v45  ;;  %v551_v57 = vpop.f32.mrb[6].mxu0  ;;  %v592_v58 = vpop.f32.mrb[6].mxu1  ;;  %v598_v40 = vadd.f32 %v590_v53, %v511_v62 }
 0x237   :  { %v599_v59 = vmul.f32 0.5, %v595_v51  ;;  %v552_v63 = vpop.f32.mrb[7].mxu0  ;;  %v593_v33 = vpop.f32.mrb[7].mxu1  ;;  %v636_v58 = vld [vmem:[%s635_s21] ss:$8 sm:$0xf] }
 0x238   :  { %v603_v34 = vmul.f32 0.5, %v596_v56  ;;  %v608_v41 = vmul.f32 0.5, %v598_v40  ;;  %v662_v60 = vrot.slane %v636_v58, %v2494_v36  ;;  %v666_v33 = vrot.slane %v636_v58, %v2496_v38  ;;  %s1146_s21 = sand.u32 7, %s1906_s17  ;;  %s1947_s17 = sshll.u32 %s1493_s16, 5 }
 0x239   :  { %2058 = vtanh.f32 %v599_v59  ;;  %v670_v62 = vrot.slane %v636_v58, %v2498_v39  ;;  %s1149_s25 = sadd.s32 %s1943_s22, %s1146_s21 }
 0x23a   :  { %2060 = vtanh.f32 %v603_v34  ;;  %s1150_s26 = scalar_lea.vmem [#allocation6], %s1149_s25 }
 0x23b   :  { %2062 = vtanh.f32 %v597_v61 }
 0x23c   :  { %2064 = vtanh.f32 %v608_v41 }
 0x243   :  { %v2059_v35 = vpop.eup %2058 }
 0x244   :  { %v2061_v37 = vpop.eup %2060  ;;  %v601_v42 = vmul.f32 0.5, %v2059_v35 }
 0x245   :  { %v605_v43 = vmul.f32 0.5, %v2061_v37  ;;  %v2063_v45 = vpop.eup %2062 }
 0x246   :  { %v602_v44 = vadd.f32 0.5, %v601_v42  ;;  %v2065_v50 = vpop.eup %2064 }
 0x247   :  { %v606_v49 = vadd.f32 0.5, %v605_v43  ;;  %v610_v52 = vmul.f32 0.5, %v2065_v50  ;;  %v674_v43 = vrot.slane %v636_v58, %v2507_v47 }
 0x248   :  { %v613_v46 = vmul.f32 %v2063_v45, %v602_v44 }
 0x249   :  { %v612_v48 = vmul.f32 %v606_v49, %v2518_v54  ;;  %v611_v55 = vadd.f32 0.5, %v610_v52  ;;  %v626_v54 = vld [vmem:[%s625_s20] ss:$8 sm:$0xf]  ;;  %s1153_s20 = sshra.s32 %s1909_s18, 3  ;;  %s1506_s18 = sand.u32 7, %s1921_s15 }
 0x24a   :  { %v641_v59 = vrot.slane %v626_v54, %v2494_v36  ;;  %v645_v63 = vrot.slane %v626_v54, %v2496_v38  ;;  %v649_v61 = vrot.slane %v626_v54, %v2498_v39  ;;  %v653_v42 = vrot.slane %v626_v54, %v2507_v47  ;;  %s1944_s24 = sshll.u32 %s1153_s20, 5 }
 0x24b   :  { %v2572_v51 = vadd.f32 %v613_v46, %v612_v48  ;;  %s1159_s0 = sadd.s32 %s1944_s24, %s1156_s23 }
 0x24c   :  { %v679_v34 = vsel %vm136_vm0, %v641_v59, %v662_v60  ;;  %v680_v40 = vsel %vm136_vm0, %v645_v63, %v666_v33  ;;  %v681_v35 = vsel %vm136_vm0, %v649_v61, %v670_v62  ;;  %s1160_s27 = scalar_lea.vmem [#allocation6], %s1159_s0  ;;  %s2279_s0 = smov [#allocation10]  }
 0x24d   :  { %2066 = vtanh.f32 %v2572_v51  ;;  %v683_v41 = vsel %vm141_vm1, %v679_v34, 0.0  ;;  %v684_v37 = vsel %vm141_vm1, %v680_v40, 0.0  ;;  %v685_v50 = vsel %vm141_vm1, %v681_v35, 0.0 }
 0x257   :  { %v2067_v53 = vpop.eup %2066 }
 0x258   :  { %v616_v56 = vmul.f32 %v2067_v53, %v611_v55 }
 0x25a   :  { %v687_v57 = vpack.c.bf16 %v616_v56, %v616_v56 }
 0x25c   :  { %721 = vmatmul.mubr.bf16.vlgmr.msra.gmra.mrb[8].mxu0 %v687_v57  ;;  %762 = vmatmul.mubr.bf16.vlgmr.msra.gmra.mrb[8].mxu1 %v687_v57  ;;  %v682_v57 = vsel %vm136_vm0, %v653_v42, %v674_v43 }
 0x25d   :  { %864 = vmatpush1.bf16.msra.mxu0 %v2360_v1  ;;  %905 = vmatpush1.bf16.msra.mxu1 %v2372_v6  ;;  %v686_v58 = vsel %vm141_vm1, %v682_v57, 0.0 }
 0x25e   :  { %865 = vmatprep.subr.bf16.mxu0 %v2365_v3  ;;  %906 = vmatprep.subr.bf16.mxu1 %v2378_v8 }
 0x25f   :  { %895 = vmatprep.mubr.bf16.mxu0 %v2276_v2  ;;  %936 = vmatprep.mubr.bf16.mxu1 %v2276_v2 }
 0x261   :  { %866 = vmatpush1.bf16.msra.mxu0 %v2370_v5  ;;  %907 = vmatpush1.bf16.msra.mxu1 %v2381_v9 }
 0x262   :  { %867 = vmatprep.subr.bf16.mxu0 %v2375_v7  ;;  %908 = vmatprep.subr.bf16.mxu1 %v2390_v12 }
 0x265   :  { %868 = vmatpush1.bf16.msra.mxu0 %v2385_v10  ;;  %909 = vmatpush1.bf16.msra.mxu1 %v2393_v13 }
 0x266   :  { %869 = vmatprep.subr.bf16.mxu0 %v2388_v11  ;;  %910 = vmatprep.subr.bf16.mxu1 %v2399_v15 }
 0x269   :  { %870 = vmatpush1.bf16.msra.mxu0 %v2397_v14  ;;  %911 = vmatpush1.bf16.msra.mxu1 %v2407_v18 }
 0x26a   :  { %871 = vmatprep.subr.bf16.mxu0 %v2402_v16  ;;  %912 = vmatprep.subr.bf16.mxu1 %v2411_v19 }
 0x26d   :  { %872 = vmatpush1.bf16.msra.mxu0 %v2405_v17  ;;  %913 = vmatpush1.bf16.msra.mxu1 %v2417_v21 }
 0x26e   :  { %873 = vmatprep.subr.bf16.mxu0 %v2414_v20  ;;  %914 = vmatprep.subr.bf16.mxu1 %v2423_v23 }
 0x271   :  { %874 = vmatpush1.bf16.msra.mxu0 %v2421_v22  ;;  %915 = vmatpush1.bf16.msra.mxu1 %v2430_v26 }
 0x272   :  { %875 = vmatprep.subr.bf16.mxu0 %v2426_v24  ;;  %916 = vmatprep.subr.bf16.mxu1 %v2435_v28 }
 0x275   :  { %876 = vmatpush1.bf16.msra.mxu0 %v2428_v25  ;;  %917 = vmatpush1.bf16.msra.mxu1 %v2440_v29 }
 0x276   :  { %877 = vmatprep.subr.bf16.mxu0 %v2433_v27  ;;  %918 = vmatprep.subr.bf16.mxu1 %v2445_v31 }
 0x279   :  { %878 = vmatpush1.bf16.msra.mxu0 %v2442_v30  ;;  %919 = vmatpush1.bf16.msra.mxu1 %v2451_v32 }
 0x27a   :  { %1038 = vmatprep.subr.bf16.mxu0 %v2358_v0  ;;  %1079 = vmatprep.subr.bf16.mxu1 %v2368_v4 }
 0x32f   :  { %v722_v44 = vpop.f32.mrb[8].mxu0  ;;  %v763_v45 = vpop.f32.mrb[8].mxu1 }
 0x330   :  { %v770_v49 = vadd.f32 %v722_v44, %v683_v41  ;;  %v724_v46 = vpop.f32.mrb[9].mxu0  ;;  %v765_v48 = vpop.f32.mrb[9].mxu1  ;;  %v772_v54 = vadd.f32 %v763_v45, %v685_v50 }
 0x331   :  { %v771_v52 = vadd.f32 %v724_v46, %v684_v37  ;;  %v726_v55 = vpop.f32.mrb[10].mxu0  ;;  %v767_v53 = vpop.f32.mrb[10].mxu1  ;;  %v773_v33 = vadd.f32 %v765_v48, %v686_v58 }
 0x332   :  { %v774_v56 = vmul.f32 0.5, %v770_v49  ;;  %v727_v59 = vpop.f32.mrb[11].mxu0  ;;  %v768_v60 = vpop.f32.mrb[11].mxu1 }
 0x333   :  { %v778_v63 = vmul.f32 0.5, %v771_v52  ;;  %v783_v34 = vmul.f32 0.5, %v773_v33 }
 0x334   :  { %2068 = vtanh.f32 %v774_v56 }
 0x335   :  { %2070 = vtanh.f32 %v778_v63 }
 0x336   :  { %2072 = vtanh.f32 %v772_v54 }
 0x337   :  { %2074 = vtanh.f32 %v783_v34 }
 0x33e   :  { %v2069_v61 = vpop.eup %2068 }
 0x33f   :  { %v2071_v62 = vpop.eup %2070  ;;  %v776_v40 = vmul.f32 0.5, %v2069_v61 }
 0x340   :  { %v780_v41 = vmul.f32 0.5, %v2071_v62  ;;  %v2073_v37 = vpop.eup %2072 }
 0x341   :  { %v777_v35 = vadd.f32 0.5, %v776_v40  ;;  %v2075_v45 = vpop.eup %2074 }
 0x342   :  { %v781_v44 = vadd.f32 0.5, %v780_v41  ;;  %v785_v46 = vmul.f32 0.5, %v2075_v45 }
 0x343   :  { %v788_v42 = vmul.f32 %v2073_v37, %v777_v35 }
 0x344   :  { %v787_v43 = vmul.f32 %v781_v44, %v2572_v51  ;;  %v786_v50 = vadd.f32 0.5, %v785_v46 }
 0x346   :  { %v2626_v49 = vadd.f32 %v788_v42, %v787_v43 }
 0x348   :  { %2076 = vtanh.f32 %v2626_v49 }
 0x352   :  { %v2077_v48 = vpop.eup %2076 }
 0x353   :  { %v791_v52 = vmul.f32 %v2077_v48, %v786_v50 }
 0x355   :  { %v862_v55 = vpack.c.bf16 %v791_v52, %v791_v52 }
 0x357   :  { %896 = vmatmul.mubr.bf16.vlgmr.msra.gmra.mrb[12].mxu0 %v862_v55  ;;  %937 = vmatmul.mubr.bf16.vlgmr.msra.gmra.mrb[12].mxu1 %v862_v55 }
 0x358   :  { %1039 = vmatpush1.bf16.msra.mxu0 %v2360_v1  ;;  %1080 = vmatpush1.bf16.msra.mxu1 %v2372_v6  ;;  %v801_v1 = vld [vmem:[%s800_s6] ss:$8 sm:$0xf]  ;;  %s1328_s6 = sshra.s32 %s1915_s29, 3 }
 0x359   :  { %1040 = vmatprep.subr.bf16.mxu0 %v2365_v3  ;;  %1081 = vmatprep.subr.bf16.mxu1 %v2378_v8  ;;  %v811_v3 = vld [vmem:[%s810_s7] ss:$8 sm:$0xf]  ;;  %v824_v8 = vrot.slane %v801_v1, %v2498_v39  ;;  %v828_v56 = vrot.slane %v801_v1, %v2507_v47  ;;  %s1321_s7 = sand.u32 7, %s1912_s28  ;;  %s1946_s10 = sshll.u32 %s1328_s6, 5 }
 0x35a   :  { %1070 = vmatprep.mubr.bf16.mxu0 %v2276_v2  ;;  %1111 = vmatprep.mubr.bf16.mxu1 %v2276_v2  ;;  %v841_v6 = vrot.slane %v811_v3, %v2496_v38  ;;  %v849_v57 = vrot.slane %v811_v3, %v2507_v47  ;;  %s1324_s11 = sadd.s32 %s1945_s8, %s1321_s7  ;;  %s1334_s12 = sadd.s32 %s1946_s10, %s1331_s9 }
 0x35b   :  { %s1325_s13 = scalar_lea.vmem [#allocation6], %s1324_s11  ;;  %s1335_s1 = scalar_lea.vmem [#allocation6], %s1334_s12 }
 0x35c   :  { %1041 = vmatpush1.bf16.msra.mxu0 %v2370_v5  ;;  %1082 = vmatpush1.bf16.msra.mxu1 %v2381_v9  ;;  %v816_v5 = vrot.slane %v801_v1, %v2494_v36  ;;  %v845_v9 = vrot.slane %v811_v3, %v2498_v39  ;;  %v857_v41 = vsel %vm136_vm0, %v828_v56, %v849_v57  ;;  %v2686_v56 = vld [vmem:[#allocation7 + $0x8] ss:$16 sps:$4 sm:$0xff]   ;;  %v2692_v57 = vld [vmem:[#allocation7 + $0x2c] ss:$16 sps:$4 sm:$0xff]  }
 0x35d   :  { %1042 = vmatprep.subr.bf16.mxu0 %v2375_v7  ;;  %1083 = vmatprep.subr.bf16.mxu1 %v2390_v12  ;;  %v861_v43 = vsel %vm141_vm1, %v857_v41, 0.0 }
 0x35e   :  { %v856_v51 = vsel %vm136_vm0, %v824_v8, %v845_v9 }
 0x35f   :  { %v860_v33 = vsel %vm141_vm1, %v856_v51, 0.0 }
 0x360   :  { %1043 = vmatpush1.bf16.msra.mxu0 %v2385_v10  ;;  %1084 = vmatpush1.bf16.msra.mxu1 %v2393_v13 }
 0x361   :  { %1044 = vmatprep.subr.bf16.mxu0 %v2388_v11  ;;  %1085 = vmatprep.subr.bf16.mxu1 %v2399_v15 }
 0x364   :  { %1045 = vmatpush1.bf16.msra.mxu0 %v2397_v14  ;;  %1086 = vmatpush1.bf16.msra.mxu1 %v2407_v18 }
 0x365   :  { %1046 = vmatprep.subr.bf16.mxu0 %v2402_v16  ;;  %1087 = vmatprep.subr.bf16.mxu1 %v2411_v19 }
 0x368   :  { %1047 = vmatpush1.bf16.msra.mxu0 %v2405_v17  ;;  %1088 = vmatpush1.bf16.msra.mxu1 %v2417_v21 }
 0x369   :  { %1048 = vmatprep.subr.bf16.mxu0 %v2414_v20  ;;  %1089 = vmatprep.subr.bf16.mxu1 %v2423_v23 }
 0x36c   :  { %1049 = vmatpush1.bf16.msra.mxu0 %v2421_v22  ;;  %1090 = vmatpush1.bf16.msra.mxu1 %v2430_v26 }
 0x36d   :  { %1050 = vmatprep.subr.bf16.mxu0 %v2426_v24  ;;  %1091 = vmatprep.subr.bf16.mxu1 %v2435_v28 }
 0x370   :  { %1051 = vmatpush1.bf16.msra.mxu0 %v2428_v25  ;;  %1092 = vmatpush1.bf16.msra.mxu1 %v2440_v29 }
 0x371   :  { %1052 = vmatprep.subr.bf16.mxu0 %v2433_v27  ;;  %1093 = vmatprep.subr.bf16.mxu1 %v2445_v31 }
 0x374   :  { %1053 = vmatpush1.bf16.msra.mxu0 %v2442_v30  ;;  %1094 = vmatpush1.bf16.msra.mxu1 %v2451_v32 }
 0x375   :  { %1213 = vmatprep.subr.bf16.mxu0 %v2358_v0  ;;  %1254 = vmatprep.subr.bf16.mxu1 %v2368_v4  ;;  %v837_v0 = vrot.slane %v811_v3, %v2494_v36  ;;  %v820_v4 = vrot.slane %v801_v1, %v2496_v38 }
 0x377   :  { %v854_v7 = vsel %vm136_vm0, %v816_v5, %v837_v0  ;;  %v855_v10 = vsel %vm136_vm0, %v820_v4, %v841_v6 }
 0x378   :  { %v858_v11 = vsel %vm141_vm1, %v854_v7, 0.0  ;;  %v859_v53 = vsel %vm141_vm1, %v855_v10, 0.0 }
 0x42a   :  { %v897_v59 = vpop.f32.mrb[12].mxu0  ;;  %v938_v60 = vpop.f32.mrb[12].mxu1 }
 0x42b   :  { %v945_v63 = vadd.f32 %v897_v59, %v858_v11  ;;  %v899_v54 = vpop.f32.mrb[13].mxu0  ;;  %v940_v58 = vpop.f32.mrb[13].mxu1  ;;  %v947_v42 = vadd.f32 %v938_v60, %v860_v33  ;;  %v2697_v59 = vld [vmem:[#allocation7 + $0x20] ss:$16 sps:$4 sm:$0xff]   ;;  %v2700_v60 = vld [vmem:[#allocation7 + $0x28] ss:$16 sps:$4 sm:$0xff]  }
 0x42c   :  { %v946_v34 = vadd.f32 %v899_v54, %v859_v53  ;;  %v901_v61 = vpop.f32.mrb[14].mxu0  ;;  %v942_v62 = vpop.f32.mrb[14].mxu1  ;;  %v948_v45 = vadd.f32 %v940_v58, %v861_v43  ;;  %v2683_v53 = vld [vmem:[#allocation7] ss:$16 sps:$4 sm:$0xff]   ;;  %v2711_v58 = vld [vmem:[#allocation7 + $0x64] ss:$16 sps:$4 sm:$0xff]  }
 0x42d   :  { %v949_v40 = vmul.f32 0.5, %v945_v63  ;;  %v902_v35 = vpop.f32.mrb[15].mxu0  ;;  %v943_v37 = vpop.f32.mrb[15].mxu1  ;;  %v2703_v63 = vld [vmem:[#allocation7 + $0x44] ss:$16 sps:$4 sm:$0xff]  }
 0x42e   :  { %v953_v44 = vmul.f32 0.5, %v946_v34  ;;  %v958_v46 = vmul.f32 0.5, %v948_v45  ;;  %v2707_v54 = vld [vmem:[#allocation7 + $0x40] ss:$16 sps:$4 sm:$0xff]  }
 0x42f   :  { %2078 = vtanh.f32 %v949_v40 }
 0x430   :  { %2080 = vtanh.f32 %v953_v44 }
 0x431   :  { %2082 = vtanh.f32 %v947_v42 }
 0x432   :  { %2084 = vtanh.f32 %v958_v46 }
 0x439   :  { %v2079_v50 = vpop.eup %2078 }
 0x43a   :  { %v2081_v48 = vpop.eup %2080  ;;  %v951_v52 = vmul.f32 0.5, %v2079_v50 }
 0x43b   :  { %v955_v55 = vmul.f32 0.5, %v2081_v48  ;;  %v2083_v3 = vpop.eup %2082 }
 0x43c   :  { %v952_v1 = vadd.f32 0.5, %v951_v52  ;;  %v2085_v7 = vpop.eup %2084 }
 0x43d   :  { %v956_v5 = vadd.f32 0.5, %v955_v55  ;;  %v960_v8 = vmul.f32 0.5, %v2085_v7 }
 0x43e   :  { %v963_v0 = vmul.f32 %v2083_v3, %v952_v1 }
 0x43f   :  { %v962_v4 = vmul.f32 %v956_v5, %v2626_v49  ;;  %v961_v9 = vadd.f32 0.5, %v960_v8  ;;  %v2689_v49 = vld [vmem:[#allocation7 + $0x24] ss:$16 sps:$4 sm:$0xff]  }
 0x441   :  { %v2680_v6 = vadd.f32 %v963_v0, %v962_v4 }
 0x443   :  { %2086 = vtanh.f32 %v2680_v6 }
 0x44d   :  { %v2087_v10 = vpop.eup %2086 }
 0x44e   :  { %v966_v11 = vmul.f32 %v2087_v10, %v961_v9 }
 0x450   :  { %v1037_v51 = vpack.c.bf16 %v966_v11, %v966_v11 }
 0x452   :  { %1071 = vmatmul.mubr.bf16.vlgmr.msra.gmra.mrb[16].mxu0 %v1037_v51  ;;  %1112 = vmatmul.mubr.bf16.vlgmr.msra.gmra.mrb[16].mxu1 %v1037_v51 }
 0x453   :  { %1214 = vmatpush1.bf16.msra.mxu0 %v2683_v53  ;;  %1255 = vmatpush1.bf16.msra.mxu1 %v2686_v56 }
 0x454   :  { %1215 = vmatprep.subr.bf16.mxu0 %v2689_v49  ;;  %1256 = vmatprep.subr.bf16.mxu1 %v2692_v57 }
 0x455   :  { %1245 = vmatprep.mubr.bf16.mxu0 %v2276_v2  ;;  %1286 = vmatprep.mubr.bf16.mxu1 %v2276_v2 }
 0x457   :  { %1216 = vmatpush1.bf16.msra.mxu0 %v2697_v59  ;;  %1257 = vmatpush1.bf16.msra.mxu1 %v2700_v60 }
 0x458   :  { %1217 = vmatprep.subr.bf16.mxu0 %v2703_v63  ;;  %1258 = vmatprep.subr.bf16.mxu1 %v2390_v12  ;;  %v2733_v12 = vld [vmem:[#allocation7 + $0x4] ss:$16 sps:$4 sm:$0xff]  }
 0x45b   :  { %1218 = vmatpush1.bf16.msra.mxu0 %v2707_v54  ;;  %1259 = vmatpush1.bf16.msra.mxu1 %v2393_v13  ;;  %v2736_v13 = vld [vmem:[#allocation7 + $0xc] ss:$16 sps:$4 sm:$0xff]  }
 0x45c   :  { %1219 = vmatprep.subr.bf16.mxu0 %v2711_v58  ;;  %1260 = vmatprep.subr.bf16.mxu1 %v2399_v15  ;;  %v986_v15 = vld [vmem:[%s985_s2] ss:$8 sm:$0xf]  ;;  %s1496_s2 = sand.u32 7, %s1918_s14 }
 0x45d   :  { %s1499_s20 = sadd.s32 %s1947_s17, %s1496_s2 }
 0x45e   :  { %s1500_s22 = scalar_lea.vmem [#allocation6], %s1499_s20 }
 0x45f   :  { %1220 = vmatpush1.bf16.msra.mxu0 %v2397_v14  ;;  %1261 = vmatpush1.bf16.msra.mxu1 %v2407_v18  ;;  %v976_v14 = vld [vmem:[%s975_s3] ss:$8 sm:$0xf]  ;;  %s1503_s3 = sshra.s32 %s1921_s15, 3 }
 0x460   :  { %1221 = vmatprep.subr.bf16.mxu0 %v2402_v16  ;;  %1262 = vmatprep.subr.bf16.mxu1 %v2411_v19  ;;  %v991_v16 = vrot.slane %v976_v14, %v2494_v36  ;;  %v995_v18 = vrot.slane %v976_v14, %v2496_v38  ;;  %v1016_v19 = vrot.slane %v986_v15, %v2496_v38  ;;  %s1948_s19 = sshll.u32 %s1503_s3, 5 }
 0x461   :  { %s1509_s21 = sadd.s32 %s1948_s19, %s1506_s18 }
 0x462   :  { %s1510_s23 = scalar_lea.vmem [#allocation6], %s1509_s21 }
 0x463   :  { %1222 = vmatpush1.bf16.msra.mxu0 %v2405_v17  ;;  %1263 = vmatpush1.bf16.msra.mxu1 %v2417_v21  ;;  %v1012_v17 = vrot.slane %v986_v15, %v2494_v36  ;;  %v999_v21 = vrot.slane %v976_v14, %v2498_v39 }
 0x464   :  { %1223 = vmatprep.subr.bf16.mxu0 %v2414_v20  ;;  %1264 = vmatprep.subr.bf16.mxu1 %v2423_v23  ;;  %v1030_v23 = vsel %vm136_vm0, %v995_v18, %v1016_v19  ;;  %v2779_v18 = vld [vmem:[#allocation7 + $0x60] ss:$16 sps:$4 sm:$0xff]   ;;  %v2782_v19 = vld [vmem:[#allocation7 + $0x68] ss:$16 sps:$4 sm:$0xff]  }
 0x465   :  { %v1029_v20 = vsel %vm136_vm0, %v991_v16, %v1012_v17  ;;  %v2772_v16 = vld [vmem:[#allocation7 + $0x48] ss:$16 sps:$4 sm:$0xff]   ;;  %v2776_v17 = vld [vmem:[#allocation7 + $0x6c] ss:$16 sps:$4 sm:$0xff]  }
 0x467   :  { %1224 = vmatpush1.bf16.msra.mxu0 %v2421_v22  ;;  %1265 = vmatpush1.bf16.msra.mxu1 %v2430_v26  ;;  %v1020_v22 = vrot.slane %v986_v15, %v2498_v39  ;;  %v1034_v26 = vsel %vm141_vm1, %v1030_v23, 0.0  ;;  %v2794_v23 = vld [vmem:[#allocation7 + $0x88] ss:$16 sps:$4 sm:$0xff]  }
 0x468   :  { %1225 = vmatprep.subr.bf16.mxu0 %v2426_v24  ;;  %1266 = vmatprep.subr.bf16.mxu1 %v2435_v28  ;;  %v1033_v24 = vsel %vm141_vm1, %v1029_v20, 0.0  ;;  %v1024_v28 = vrot.slane %v986_v15, %v2507_v47  ;;  %v2785_v20 = vld [vmem:[#allocation7 + $0x84] ss:$16 sps:$4 sm:$0xff]  }
 0x46b   :  { %1226 = vmatpush1.bf16.msra.mxu0 %v2428_v25  ;;  %1267 = vmatpush1.bf16.msra.mxu1 %v2440_v29  ;;  %v1031_v25 = vsel %vm136_vm0, %v999_v21, %v1020_v22  ;;  %v2788_v21 = vld [vmem:[#allocation7 + $0x8c] ss:$16 sps:$4 sm:$0xff]   ;;  %v2791_v22 = vld [vmem:[#allocation7 + $0x80] ss:$16 sps:$4 sm:$0xff]  }
 0x46c   :  { %1227 = vmatprep.subr.bf16.mxu0 %v2433_v27  ;;  %1268 = vmatprep.subr.bf16.mxu1 %v2445_v31  ;;  %v1003_v27 = vrot.slane %v976_v14, %v2507_v47  ;;  %v1035_v34 = vsel %vm141_vm1, %v1031_v25, 0.0  ;;  %v2800_v25 = vld [vmem:[#allocation7 + $0xac] ss:$16 sps:$4 sm:$0xff]  }
 0x46e   :  { %v1032_v35 = vsel %vm136_vm0, %v1003_v27, %v1024_v28  ;;  %v2806_v27 = vld [vmem:[#allocation7 + $0xa8] ss:$16 sps:$4 sm:$0xff]   ;;  %v2809_v28 = vld [vmem:[#allocation7 + $0xc4] ss:$16 sps:$4 sm:$0xff]  }
 0x46f   :  { %1228 = vmatpush1.bf16.msra.mxu0 %v2442_v30  ;;  %1269 = vmatpush1.bf16.msra.mxu1 %v2451_v32  ;;  %v1036_v45 = vsel %vm141_vm1, %v1032_v35, 0.0 }
 0x470   :  { %1388 = vmatprep.subr.bf16.mxu0 %v2733_v12  ;;  %1429 = vmatprep.subr.bf16.mxu1 %v2736_v13 }
 0x525   :  { %v1072_v29 = vpop.f32.mrb[16].mxu0  ;;  %v1113_v30 = vpop.f32.mrb[16].mxu1 }
 0x526   :  { %v1120_v31 = vadd.f32 %v1072_v29, %v1033_v24  ;;  %v1074_v32 = vpop.f32.mrb[17].mxu0  ;;  %v1115_v33 = vpop.f32.mrb[17].mxu1  ;;  %v1122_v43 = vadd.f32 %v1113_v30, %v1035_v34  ;;  %v2797_v24 = vld [vmem:[#allocation7 + $0xa4] ss:$16 sps:$4 sm:$0xff]   ;;  %v2812_v29 = vld [vmem:[#allocation7 + $0xcc] ss:$16 sps:$4 sm:$0xff]  }
 0x527   :  { %v1121_v61 = vadd.f32 %v1074_v32, %v1034_v26  ;;  %v1076_v62 = vpop.f32.mrb[18].mxu0  ;;  %v1117_v40 = vpop.f32.mrb[18].mxu1  ;;  %v1123_v46 = vadd.f32 %v1115_v33, %v1036_v45  ;;  %v2803_v26 = vld [vmem:[#allocation7 + $0xa0] ss:$16 sps:$4 sm:$0xff]   ;;  %v2821_v32 = vld [vmem:[#allocation7 + $0xe4] ss:$16 sps:$4 sm:$0xff]  }
 0x528   :  { %v1124_v41 = vmul.f32 0.5, %v1120_v31  ;;  %v1077_v37 = vpop.f32.mrb[19].mxu0  ;;  %v1118_v44 = vpop.f32.mrb[19].mxu1  ;;  %v2815_v30 = vld [vmem:[#allocation7 + $0xc0] ss:$16 sps:$4 sm:$0xff]  }
 0x529   :  { %v1128_v42 = vmul.f32 0.5, %v1121_v61  ;;  %v1133_v50 = vmul.f32 0.5, %v1123_v46  ;;  %v2818_v31 = vld [vmem:[#allocation7 + $0xc8] ss:$16 sps:$4 sm:$0xff]   ;;  %v2824_v33 = vld [vmem:[#allocation7 + $0xec] ss:$16 sps:$4 sm:$0xff]  }
 0x52a   :  { %2088 = vtanh.f32 %v1124_v41  ;;  %v2827_v34 = vld [vmem:[#allocation7 + $0xe0] ss:$16 sps:$4 sm:$0xff]   ;;  %v2830_v61 = vld [vmem:[#allocation7 + $0xe8] ss:$16 sps:$4 sm:$0xff]  }
 0x52b   :  { %2090 = vtanh.f32 %v1128_v42  ;;  %v1151_v62 = vld [vmem:[%s1150_s26] ss:$8 sm:$0xf]  ;;  %s1786_s26 = sshll.u32 %s2279_s0, 4  ;;  %s1787_s26 = int_to_ptr.vmem [resolvable:$true] %s1786_s26 }
 0x52c   :  { %2092 = vtanh.f32 %v1122_v43  ;;  %v1161_v40 = vld [vmem:[%s1160_s27] ss:$8 sm:$0xf]  ;;  %v1166_v41 = vrot.slane %v1151_v62, %v2494_v36  ;;  %v1174_v44 = vrot.slane %v1151_v62, %v2498_v39  ;;  %s2236_s27 = scalar_lea.vmem %s1787_s26, 128  ;;  %p2241_p0 = scmp.lt.s32.totalorder %s1787_s26, %s1787_s26 }
 0x52d   :  { %2094 = vtanh.f32 %v1133_v50  ;;  %v1191_v35 = vrot.slane %v1161_v40, %v2496_v38  ;;  %v1195_v42 = vrot.slane %v1161_v40, %v2498_v39  ;;  %p2237_p13 = scmp.ne.s32.totalorder %s1787_s26, %s2236_s27  ;;  %p2242_p1 = scmp.lt.s32.totalorder %s2236_s27, %s2236_s27 }
 0x52f   :  { %v1206_v46 = vsel %vm136_vm0, %v1174_v44, %v1195_v42  ;;  %p2243_p2 = por %p2242_p1, %p2241_p0 }
 0x531   :  { %p2244_p3 = pnand %p2243_p2, %p2237_p13 }
 0x534   :  { %v2089_v48 = vpop.eup %2088 }
 0x535   :  { %v2091_v52 = vpop.eup %2090  ;;  %v1126_v55 = vmul.f32 0.5, %v2089_v48  ;;  %v1178_v48 = vrot.slane %v1151_v62, %v2507_v47 }
 0x536   :  { %v1130_v1 = vmul.f32 0.5, %v2091_v52  ;;  %v2093_v5 = vpop.eup %2092  ;;  %v1199_v52 = vrot.slane %v1161_v40, %v2507_v47 }
 0x537   :  { %v1127_v3 = vadd.f32 0.5, %v1126_v55  ;;  %v2095_v9 = vpop.eup %2094 }
 0x538   :  { %v1131_v0 = vadd.f32 0.5, %v1130_v1  ;;  %v1135_v10 = vmul.f32 0.5, %v2095_v9 }
 0x539   :  { %v1138_v4 = vmul.f32 %v2093_v5, %v1127_v3 }
 0x53a   :  { %v1137_v7 = vmul.f32 %v1131_v0, %v2680_v6  ;;  %v1136_v11 = vadd.f32 0.5, %v1135_v10  ;;  %v2768_v6 = vld [vmem:[#allocation7 + $0x4c] ss:$16 sps:$4 sm:$0xff]  }
 0x53c   :  { %v2756_v8 = vadd.f32 %v1138_v4, %v1137_v7  ;;  %v1210_v4 = vsel %vm141_vm1, %v1206_v46, 0.0 }
 0x53e   :  { %2096 = vtanh.f32 %v2756_v8 }
 0x548   :  { %v2097_v51 = vpop.eup %2096 }
 0x549   :  { %v1141_v14 = vmul.f32 %v2097_v51, %v1136_v11  ;;  %v1207_v51 = vsel %vm136_vm0, %v1178_v48, %v1199_v52 }
 0x54b   :  { %v1212_v15 = vpack.c.bf16 %v1141_v14, %v1141_v14 }
 0x54d   :  { %1246 = vmatmul.mubr.bf16.vlgmr.msra.gmra.mrb[20].mxu0 %v1212_v15  ;;  %1287 = vmatmul.mubr.bf16.vlgmr.msra.gmra.mrb[20].mxu1 %v1212_v15 }
 0x54e   :  { %1389 = vmatpush1.bf16.msra.mxu0 %v2683_v53  ;;  %1430 = vmatpush1.bf16.msra.mxu1 %v2686_v56 }
 0x54f   :  { %1390 = vmatprep.subr.bf16.mxu0 %v2689_v49  ;;  %1431 = vmatprep.subr.bf16.mxu1 %v2692_v57 }
 0x550   :  { %1420 = vmatprep.mubr.bf16.mxu0 %v2276_v2  ;;  %1461 = vmatprep.mubr.bf16.mxu1 %v2276_v2 }
 0x552   :  { %1391 = vmatpush1.bf16.msra.mxu0 %v2697_v59  ;;  %1432 = vmatpush1.bf16.msra.mxu1 %v2700_v60 }
 0x553   :  { %1392 = vmatprep.subr.bf16.mxu0 %v2703_v63  ;;  %1433 = vmatprep.subr.bf16.mxu1 %v2768_v6 }
 0x556   :  { %1393 = vmatpush1.bf16.msra.mxu0 %v2707_v54  ;;  %1434 = vmatpush1.bf16.msra.mxu1 %v2772_v16 }
 0x557   :  { %1394 = vmatprep.subr.bf16.mxu0 %v2711_v58  ;;  %1435 = vmatprep.subr.bf16.mxu1 %v2776_v17 }
 0x55a   :  { %1395 = vmatpush1.bf16.msra.mxu0 %v2779_v18  ;;  %1436 = vmatpush1.bf16.msra.mxu1 %v2782_v19 }
 0x55b   :  { %1396 = vmatprep.subr.bf16.mxu0 %v2785_v20  ;;  %1437 = vmatprep.subr.bf16.mxu1 %v2788_v21 }
 0x55e   :  { %1397 = vmatpush1.bf16.msra.mxu0 %v2791_v22  ;;  %1438 = vmatpush1.bf16.msra.mxu1 %v2794_v23 }
 0x55f   :  { %1398 = vmatprep.subr.bf16.mxu0 %v2797_v24  ;;  %1439 = vmatprep.subr.bf16.mxu1 %v2800_v25 }
 0x562   :  { %1399 = vmatpush1.bf16.msra.mxu0 %v2803_v26  ;;  %1440 = vmatpush1.bf16.msra.mxu1 %v2806_v27 }
 0x563   :  { %1400 = vmatprep.subr.bf16.mxu0 %v2809_v28  ;;  %1441 = vmatprep.subr.bf16.mxu1 %v2812_v29 }
 0x566   :  { %1401 = vmatpush1.bf16.msra.mxu0 %v2815_v30  ;;  %1442 = vmatpush1.bf16.msra.mxu1 %v2818_v31 }
 0x567   :  { %1402 = vmatprep.subr.bf16.mxu0 %v2821_v32  ;;  %1443 = vmatprep.subr.bf16.mxu1 %v2824_v33 }
 0x56a   :  { %1403 = vmatpush1.bf16.msra.mxu0 %v2827_v34  ;;  %1444 = vmatpush1.bf16.msra.mxu1 %v2830_v61 }
 0x56b   :  { %1563 = vmatprep.subr.bf16.mxu0 %v2733_v12  ;;  %1604 = vmatprep.subr.bf16.mxu1 %v2736_v13  ;;  %v1187_v12 = vrot.slane %v1161_v40, %v2494_v36  ;;  %v1170_v13 = vrot.slane %v1151_v62, %v2496_v38  ;;  %v1211_v40 = vsel %vm141_vm1, %v1207_v51, 0.0 }
 0x56d   :  { %v1204_v37 = vsel %vm136_vm0, %v1166_v41, %v1187_v12  ;;  %v1205_v43 = vsel %vm136_vm0, %v1170_v13, %v1191_v35 }
 0x56e   :  { %v1208_v45 = vsel %vm141_vm1, %v1204_v37, 0.0  ;;  %v1209_v50 = vsel %vm141_vm1, %v1205_v43, 0.0 }
 0x620   :  { %v1247_v55 = vpop.f32.mrb[20].mxu0  ;;  %v1288_v1 = vpop.f32.mrb[20].mxu1 }
 0x621   :  { %v1295_v3 = vadd.f32 %v1247_v55, %v1208_v45  ;;  %v1249_v5 = vpop.f32.mrb[21].mxu0  ;;  %v1290_v0 = vpop.f32.mrb[21].mxu1  ;;  %v1297_v62 = vadd.f32 %v1288_v1, %v1210_v4 }
 0x622   :  { %v1296_v7 = vadd.f32 %v1249_v5, %v1209_v50  ;;  %v1251_v9 = vpop.f32.mrb[22].mxu0  ;;  %v1292_v10 = vpop.f32.mrb[22].mxu1  ;;  %v1298_v12 = vadd.f32 %v1290_v0, %v1211_v40 }
 0x623   :  { %v1299_v11 = vmul.f32 0.5, %v1295_v3  ;;  %v1252_v14 = vpop.f32.mrb[23].mxu0  ;;  %v1293_v15 = vpop.f32.mrb[23].mxu1 }
 0x624   :  { %v1303_v41 = vmul.f32 0.5, %v1296_v7  ;;  %v1308_v13 = vmul.f32 0.5, %v1298_v12 }
 0x625   :  { %2098 = vtanh.f32 %v1299_v11 }
 0x626   :  { %2100 = vtanh.f32 %v1303_v41 }
 0x627   :  { %2102 = vtanh.f32 %v1297_v62 }
 0x628   :  { %2104 = vtanh.f32 %v1308_v13 }
 0x62f   :  { %v2099_v35 = vpop.eup %2098 }
 0x630   :  { %v2101_v37 = vpop.eup %2100  ;;  %v1301_v44 = vmul.f32 0.5, %v2099_v35 }
 0x631   :  { %v1305_v42 = vmul.f32 0.5, %v2101_v37  ;;  %v2103_v45 = vpop.eup %2102 }
 0x632   :  { %v1302_v43 = vadd.f32 0.5, %v1301_v44  ;;  %v2105_v55 = vpop.eup %2104 }
 0x633   :  { %v1306_v46 = vadd.f32 0.5, %v1305_v42  ;;  %v1310_v1 = vmul.f32 0.5, %v2105_v55  ;;  %v2044_v55 = vld [vmem:[#allocation9 + $0x20] sm:$0xff]  }
 0x634   :  { %v1313_v50 = vmul.f32 %v2103_v45, %v1302_v43  ;;  %v2040_v45 = vld [vmem:[#allocation9] sm:$0xff]  }
 0x635   :  { %v1312_v48 = vmul.f32 %v1306_v46, %v2756_v8  ;;  %v1311_v3 = vadd.f32 0.5, %v1310_v1  ;;  %v2277_v46 = vmov 0.0   ;;  %v2045_v1 = vld [vmem:[#allocation9 + $0x28] sm:$0xff]  }
 0x637   :  { %v2852_v52 = vadd.f32 %v1313_v50, %v1312_v48  ;;  %v2041_v50 = vld [vmem:[#allocation9 + $0x8] sm:$0xff]   ;;  %v2042_v48 = vld [vmem:[#allocation9 + $0x10] sm:$0xff]  }
 0x639   :  { %2106 = vtanh.f32 %v2852_v52 }
 0x643   :  { %v2107_v5 = vpop.eup %2106 }
 0x644   :  { %v1316_v0 = vmul.f32 %v2107_v5, %v1311_v3  ;;  %v2046_v3 = vld [vmem:[#allocation9 + $0x30] sm:$0xff]   ;;  %v2047_v5 = vld [vmem:[#allocation9 + $0x38] sm:$0xff]  }
 0x646   :  { %v1387_v4 = vpack.c.bf16 %v1316_v0, %v1316_v0  ;;  %v1501_v0 = vld [vmem:[%s1500_s22] ss:$8 sm:$0xf] }
 0x648   :  { %1421 = vmatmul.mubr.bf16.vlgmr.msra.gmra.mrb[24].mxu0 %v1387_v4  ;;  %1462 = vmatmul.mubr.bf16.vlgmr.msra.gmra.mrb[24].mxu1 %v1387_v4  ;;  %v1511_v4 = vld [vmem:[%s1510_s23] ss:$8 sm:$0xf] }
 0x649   :  { %1564 = vmatpush1.bf16.msra.mxu0 %v2683_v53  ;;  %1605 = vmatpush1.bf16.msra.mxu1 %v2686_v56  ;;  %v1336_v53 = vld [vmem:[%s1335_s1] ss:$8 sm:$0xf] }
 0x64a   :  { %1565 = vmatprep.subr.bf16.mxu0 %v2689_v49  ;;  %1606 = vmatprep.subr.bf16.mxu1 %v2692_v57  ;;  %v1362_v49 = vrot.slane %v1336_v53, %v2494_v36 }
 0x64b   :  { %1595 = vmatprep.mubr.bf16.mxu0 %v2276_v2  ;;  %1636 = vmatprep.mubr.bf16.mxu1 %v2276_v2  ;;  %v1326_v2 = vld [vmem:[%s1325_s13] ss:$8 sm:$0xf] }
 0x64c   :  { %v1341_v56 = vrot.slane %v1326_v2, %v2494_v36  ;;  %v1345_v57 = vrot.slane %v1326_v2, %v2496_v38 }
 0x64d   :  { %1566 = vmatpush1.bf16.msra.mxu0 %v2697_v59  ;;  %1607 = vmatpush1.bf16.msra.mxu1 %v2700_v60  ;;  %v1366_v59 = vrot.slane %v1336_v53, %v2496_v38 }
 0x64e   :  { %1567 = vmatprep.subr.bf16.mxu0 %v2703_v63  ;;  %1608 = vmatprep.subr.bf16.mxu1 %v2768_v6  ;;  %v1379_v60 = vsel %vm136_vm0, %v1341_v56, %v1362_v49  ;;  %v1349_v63 = vrot.slane %v1326_v2, %v2498_v39  ;;  %v1520_v56 = vrot.slane %v1501_v0, %v2496_v38 }
 0x64f   :  { %v1383_v8 = vsel %vm141_vm1, %v1379_v60, 0.0  ;;  %v1541_v49 = vrot.slane %v1511_v4, %v2496_v38  ;;  %v1545_v60 = vrot.slane %v1511_v4, %v2498_v39 }
 0x651   :  { %1568 = vmatpush1.bf16.msra.mxu0 %v2707_v54  ;;  %1609 = vmatpush1.bf16.msra.mxu1 %v2772_v16  ;;  %v1370_v54 = vrot.slane %v1336_v53, %v2498_v39 }
 0x652   :  { %1569 = vmatprep.subr.bf16.mxu0 %v2711_v58  ;;  %1610 = vmatprep.subr.bf16.mxu1 %v2776_v17  ;;  %v1380_v58 = vsel %vm136_vm0, %v1345_v57, %v1366_v59  ;;  %v1353_v17 = vrot.slane %v1326_v2, %v2507_v47  ;;  %v1516_v2 = vrot.slane %v1501_v0, %v2494_v36 }
 0x653   :  { %v1381_v6 = vsel %vm136_vm0, %v1349_v63, %v1370_v54  ;;  %v1384_v16 = vsel %vm141_vm1, %v1380_v58, 0.0  ;;  %v1524_v59 = vrot.slane %v1501_v0, %v2498_v39  ;;  %v1555_v63 = vsel %vm136_vm0, %v1520_v56, %v1541_v49 }
 0x655   :  { %1570 = vmatpush1.bf16.msra.mxu0 %v2779_v18  ;;  %1611 = vmatpush1.bf16.msra.mxu1 %v2782_v19  ;;  %v1374_v18 = vrot.slane %v1336_v53, %v2507_v47  ;;  %v1537_v53 = vrot.slane %v1511_v4, %v2494_v36  ;;  %v1556_v58 = vsel %vm136_vm0, %v1524_v59, %v1545_v60 }
 0x656   :  { %1571 = vmatprep.subr.bf16.mxu0 %v2785_v20  ;;  %1612 = vmatprep.subr.bf16.mxu1 %v2788_v21  ;;  %v1528_v36 = vrot.slane %v1501_v0, %v2507_v47 }
 0x657   :  { %v1554_v57 = vsel %vm136_vm0, %v1516_v2, %v1537_v53 }
 0x658   :  { %v1558_v54 = vsel %vm141_vm1, %v1554_v57, 0.0 }
 0x659   :  { %1572 = vmatpush1.bf16.msra.mxu0 %v2791_v22  ;;  %1613 = vmatpush1.bf16.msra.mxu1 %v2794_v23 }
 0x65a   :  { %1573 = vmatprep.subr.bf16.mxu0 %v2797_v24  ;;  %1614 = vmatprep.subr.bf16.mxu1 %v2800_v25  ;;  %v1385_v24 = vsel %vm141_vm1, %v1381_v6, 0.0  ;;  %v1549_v6 = vrot.slane %v1511_v4, %v2507_v47 }
 0x65d   :  { %1574 = vmatpush1.bf16.msra.mxu0 %v2803_v26  ;;  %1615 = vmatpush1.bf16.msra.mxu1 %v2806_v27 }
 0x65e   :  { %1575 = vmatprep.subr.bf16.mxu0 %v2809_v28  ;;  %1616 = vmatprep.subr.bf16.mxu1 %v2812_v29  ;;  %v1382_v29 = vsel %vm136_vm0, %v1353_v17, %v1374_v18 }
 0x661   :  { %1576 = vmatpush1.bf16.msra.mxu0 %v2815_v30  ;;  %1617 = vmatpush1.bf16.msra.mxu1 %v2818_v31 }
 0x662   :  { %1577 = vmatprep.subr.bf16.mxu0 %v2821_v32  ;;  %1618 = vmatprep.subr.bf16.mxu1 %v2824_v33 }
 0x665   :  { %1578 = vmatpush1.bf16.msra.mxu0 %v2827_v34  ;;  %1619 = vmatpush1.bf16.msra.mxu1 %v2830_v61  ;;  %v1386_v34 = vsel %vm141_vm1, %v1382_v29, 0.0 }
 0x666   :  { %1958 = vmatprep.subr.bf16.mxu0 %v2277_v46 }
 0x71b   :  { %v1422_v19 = vpop.f32.mrb[24].mxu0  ;;  %v1463_v20 = vpop.f32.mrb[24].mxu1 }
 0x71c   :  { %v1470_v21 = vadd.f32 %v1422_v19, %v1383_v8  ;;  %v1424_v22 = vpop.f32.mrb[25].mxu0  ;;  %v1465_v23 = vpop.f32.mrb[25].mxu1  ;;  %v1472_v33 = vadd.f32 %v1463_v20, %v1385_v24  ;;  %v1559_v8 = vsel %vm141_vm1, %v1555_v63, 0.0  ;;  %v1560_v20 = vsel %vm141_vm1, %v1556_v58, 0.0 }
 0x71d   :  { %v1471_v25 = vadd.f32 %v1424_v22, %v1384_v16  ;;  %v1426_v26 = vpop.f32.mrb[26].mxu0  ;;  %v1467_v27 = vpop.f32.mrb[26].mxu1  ;;  %v1473_v61 = vadd.f32 %v1465_v23, %v1386_v34  ;;  %v1557_v24 = vsel %vm136_vm0, %v1528_v36, %v1549_v6 }
 0x71e   :  { %v1474_v28 = vmul.f32 0.5, %v1470_v21  ;;  %v1427_v30 = vpop.f32.mrb[27].mxu0  ;;  %v1468_v31 = vpop.f32.mrb[27].mxu1  ;;  %v1561_v47 = vsel %vm141_vm1, %v1557_v24, 0.0 }
 0x71f   :  { %v1478_v32 = vmul.f32 0.5, %v1471_v25  ;;  %v1483_v7 = vmul.f32 0.5, %v1473_v61 }
 0x720   :  { %2108 = vtanh.f32 %v1474_v28 }
 0x721   :  { %2110 = vtanh.f32 %v1478_v32 }
 0x722   :  { %2112 = vtanh.f32 %v1472_v33 }
 0x723   :  { %2114 = vtanh.f32 %v1483_v7 }
 0x72a   :  { %v2109_v9 = vpop.eup %2108 }
 0x72b   :  { %v2111_v10 = vpop.eup %2110  ;;  %v1476_v11 = vmul.f32 0.5, %v2109_v9 }
 0x72c   :  { %v1480_v51 = vmul.f32 0.5, %v2111_v10  ;;  %v2113_v15 = vpop.eup %2112 }
 0x72d   :  { %v1477_v14 = vadd.f32 0.5, %v1476_v11  ;;  %v2115_v13 = vpop.eup %2114 }
 0x72e   :  { %v1481_v41 = vadd.f32 0.5, %v1480_v51  ;;  %v1485_v35 = vmul.f32 0.5, %v2115_v13 }
 0x72f   :  { %v1488_v62 = vmul.f32 %v2113_v15, %v1477_v14 }
 0x730   :  { %v1487_v40 = vmul.f32 %v1481_v41, %v2852_v52  ;;  %v1486_v37 = vadd.f32 0.5, %v1485_v35  ;;  %v2043_v52 = vld [vmem:[#allocation9 + $0x18] sm:$0xff]   ;;  %v1924_v35 = vld [vmem:[%s2943_s4] ss:$0 sm:$0xff] }
 0x732   :  { %v2904_v12 = vadd.f32 %v1488_v62, %v1487_v40 }
 0x734   :  { %2116 = vtanh.f32 %v2904_v12 }
 0x73e   :  { %v2117_v44 = vpop.eup %2116 }
 0x73f   :  { %v1491_v42 = vmul.f32 %v2117_v44, %v1486_v37 }
 0x741   :  { %v1562_v43 = vpack.c.bf16 %v1491_v42, %v1491_v42 }
 0x743   :  { %1596 = vmatmul.mubr.bf16.vlgmr.msra.gmra.mrb[28].mxu0 %v1562_v43  ;;  %1637 = vmatmul.mubr.bf16.vlgmr.msra.gmra.mrb[28].mxu1 %v1562_v43 }
 0x744   :  { %1959 = vmatpush3.bf16.msra.mxu0 %v2040_v45  ;;  %1974 = vmatprep.mubr.msk.bf16.mxu0 %vm2278_vm2, %v2277_v46 }
 0x745   :  { %1960 = vmatprep.subr.bf16.mxu0 %v2277_v46 }
 0x748   :  { %1961 = vmatpush3.bf16.msra.mxu0 %v2041_v50 }
 0x749   :  { %1962 = vmatprep.subr.bf16.mxu0 %v2277_v46 }
 0x74c   :  { %1963 = vmatpush3.bf16.msra.mxu0 %v2042_v48 }
 0x74d   :  { %1964 = vmatprep.subr.bf16.mxu0 %v2277_v46 }
 0x750   :  { %1965 = vmatpush3.bf16.msra.mxu0 %v2043_v52 }
 0x751   :  { %1966 = vmatprep.subr.bf16.mxu0 %v2277_v46 }
 0x754   :  { %1967 = vmatpush3.bf16.msra.mxu0 %v2044_v55 }
 0x755   :  { %1968 = vmatprep.subr.bf16.mxu0 %v2277_v46 }
 0x758   :  { %1969 = vmatpush3.bf16.msra.mxu0 %v2045_v1 }
 0x759   :  { %1970 = vmatprep.subr.bf16.mxu0 %v2277_v46 }
 0x75c   :  { %1971 = vmatpush3.bf16.msra.mxu0 %v2046_v3 }
 0x75d   :  { %1972 = vmatprep.subr.bf16.mxu0 %v2277_v46 }
 0x760   :  { %1973 = vmatpush3.bf16.msra.mxu0 %v2047_v5 }
 0x816   :  { %v1597_v16 = vpop.f32.mrb[28].mxu0  ;;  %v1638_v38 = vpop.f32.mrb[28].mxu1 }
 0x817   :  { %v1645_v17 = vadd.f32 %v1597_v16, %v1558_v54  ;;  %v1599_v18 = vpop.f32.mrb[29].mxu0  ;;  %v1640_v19 = vpop.f32.mrb[29].mxu1  ;;  %v1647_v28 = vadd.f32 %v1638_v38, %v1560_v20 }
 0x818   :  { %v1646_v39 = vadd.f32 %v1599_v18, %v1559_v8  ;;  %v1601_v21 = vpop.f32.mrb[30].mxu0  ;;  %v1642_v22 = vpop.f32.mrb[30].mxu1  ;;  %v1648_v29 = vadd.f32 %v1640_v19, %v1561_v47 }
 0x819   :  { %v1649_v23 = vmul.f32 0.5, %v1645_v17  ;;  %v1602_v25 = vpop.f32.mrb[31].mxu0  ;;  %v1643_v26 = vpop.f32.mrb[31].mxu1 }
 0x81a   :  { %v1653_v27 = vmul.f32 0.5, %v1646_v39  ;;  %v1658_v30 = vmul.f32 0.5, %v1648_v29 }
 0x81b   :  { %2118 = vtanh.f32 %v1649_v23 }
 0x81c   :  { %2120 = vtanh.f32 %v1653_v27 }
 0x81d   :  { %2122 = vtanh.f32 %v1647_v28 }
 0x81e   :  { %2124 = vtanh.f32 %v1658_v30 }
 0x825   :  { %v2119_v31 = vpop.eup %2118 }
 0x826   :  { %v2121_v32 = vpop.eup %2120  ;;  %v1651_v33 = vmul.f32 0.5, %v2119_v31 }
 0x827   :  { %v1655_v34 = vmul.f32 0.5, %v2121_v32  ;;  %v2123_v7 = vpop.eup %2122 }
 0x828   :  { %v1652_v61 = vadd.f32 0.5, %v1651_v33  ;;  %v2125_v14 = vpop.eup %2124 }
 0x829   :  { %v1656_v9 = vadd.f32 0.5, %v1655_v34  ;;  %v1660_v15 = vmul.f32 0.5, %v2125_v14 }
 0x82a   :  { %v1663_v10 = vmul.f32 %v2123_v7, %v1652_v61 }
 0x82b   :  { %v1662_v11 = vmul.f32 %v1656_v9, %v2904_v12  ;;  %v1661_v41 = vadd.f32 0.5, %v1660_v15 }
 0x82d   :  { %v1664_v51 = vadd.f32 %v1663_v10, %v1662_v11 }
 0x82f   :  { %2126 = vtanh.f32 %v1664_v51 }
 0x839   :  { %v2127_v62 = vpop.eup %2126 }
 0x83a   :  { %v1666_v40 = vmul.f32 %v2127_v62, %v1661_v41 }
 0x83c   :  { %v1667_v13 = vpack.c.bf16 %v1666_v40, %v1666_v40 }
 0x83e   :  { %1975 = vmatmul.mubr.bf16.vlgmr.msra.gmra.mrb[32].mxu0 %v1667_v13 }
 0x911   :  { %v1773_v37 = vpop.f32.mrb[32].mxu0 }
 0x912   :  { %v1774_v44 = vadd.f32 %v1924_v35, %v1773_v37  ;;  %v1976_v42 = vpop.f32.mrb[33].mxu0 }
 0x913   :  { %v1776_v12 = vpop.f32.mrb[34].mxu0 }
 0x914   :  { %1779 = vst [vmem:[#allocation10] sm:$0xff] %v1774_v44  ;;  %v1977_v43 = vpop.f32.mrb[35].mxu0 }
 0x915   :  { %2247 = shalt.err (!%p2244_p3)
}
 0x916   :  { %s2248_s4 = scalar_lea.hbm %s2944_s5, 128 }
 0x917   :  { %p2249_p4 = scmp.ne.s32.totalorder %s2944_s5, %s2248_s4  ;;  %p2252_p5 = scmp.lt.u32.totalorder %s2248_s4, %s2944_s5 }
 0x919   :  { %p2254_p6 = pnand %p2252_p5, %p2249_p4 }
 0x91b   :  { %2257 = shalt.err (!%p2254_p6)
}
 0x91c   :  { %1789 = dma.vmem_to_hbm [thread:$0]  %s1787_s26, 128, %s2944_s5, [#allocation4]  }
 0x91d   :  { %2264 = dma.done.wait [#allocation4], 128  }
 0x91e   :  { %2265 = vsyncadd [#allocation4], 4294967168 }
 0x91f   :  { %1793 = vsyncpa [#allocation3], 1 }
 0x920   :  { %1794 = vsyncpa [#allocation8], 1 }
 0x921   :  { %1795 = vsyncpa [#allocation4], 1 }
 0x922   :  { %1796 = vsyncpa [#allocation5], 1 }

</bundles_post_ra>
